<compile_context>
chip_gen: v7x
topology: tpu7x:2x2x1
jax: 0.10.0
libtpu: 0.0.40
codegen_flags: <defaults>
</compile_context>

<pallas_src>
import functools

import jax
import jax.numpy as jnp
from jax.experimental import pallas as pl
from jax.experimental.pallas import tpu as pltpu  # noqa: F401  (TPU backend assumed)

# ----- small ViT config (structurally identical to vit_b_16, smaller dims) -----
IMG = 32               # image height/width
PATCH = 16             # patch size (same as vit_b_16)
CHANNELS = 3
HIDDEN = 32            # embedding dim
HEADS = 4
HEAD_DIM = HIDDEN // HEADS
MLP = 64
LAYERS = 2
NUM_CLASSES = 10
NUM_CLASSES_PAD = 128  # lane-dense head output; sliced back to NUM_CLASSES outside
LN_EPS = 1e-6          # torchvision ViT uses LayerNorm(eps=1e-6)
NP = (IMG // PATCH) ** 2        # patches per image
SEQ = NP + 1                    # patches + class token
NEG_INF = -1e30                 # additive mask value (exp underflows to exactly 0)


# ----------------------------- in-kernel helpers -----------------------------
def _layernorm_rows(x, g, b):
    mean = jnp.mean(x, axis=-1, keepdims=True)
    var = jnp.mean(jnp.square(x - mean), axis=-1, keepdims=True)
    return (x - mean) * jax.lax.rsqrt(var + LN_EPS) * g + b


def _gelu_exact(x):
    # exact erf-based GELU, matching torch.nn.GELU()
    return 0.5 * x * (1.0 + jax.lax.erf(x * 0.7071067811865476))


# ----------------------------- fused ViT kernel -----------------------------
def _vit_kernel(B,
                patches_ref, attn_bias_ref, conv_wt_ref, conv_b_ref, seq_bias_ref,
                ln1_g_ref, ln1_b_ref, qkv_wt_ref, qkv_b_ref,
                out_wt_ref, out_b_ref, ln2_g_ref, ln2_b_ref,
                w1t_ref, b1_ref, w2t_ref, b2_ref,
                lnf_g_ref, lnf_b_ref, fc_wt_ref, fc_b_ref,
                logits_ref):
    BS = B * SEQ

    # ---- patch embedding: one (B*NP, C*P*P) @ (C*P*P, HIDDEN) matmul ----
    tok = (jnp.dot(patches_ref[...], conv_wt_ref[...],
                   preferred_element_type=jnp.float32) + conv_b_ref[...])

    # ---- assemble the residual stream as a VALUE (no VMEM scratch, no grid) ----
    rows = []
    for b in range(B):
        rows.append(seq_bias_ref[0:1, :])                                 # cls + pos[0]
        rows.append(tok[b * NP:(b + 1) * NP, :] + seq_bias_ref[1:SEQ, :])  # patches+pos
    x = jnp.concatenate(rows, axis=0)                                     # (B*SEQ, HIDDEN)

    # additive block-diagonal mask over the HEADS*B groups of SEQ rows
    attn_bias = attn_bias_ref[...]                                        # (H*BS, H*BS)

    # TODO(synk): if LAYERS/B grow, switch these unrolled Python loops to
    # lax.fori_loop(unroll=True) and add a "parallel" batch-chunk grid axis
    # (or core_map) so v7x's second TensorCore gets half the batch.
    for layer in range(LAYERS):
        # --- multi-head self-attention block (pre-LN, residual fused in) ---
        y = _layernorm_rows(x, ln1_g_ref[layer], ln1_b_ref[layer])
        qkv = (jnp.dot(y, qkv_wt_ref[layer],
                       preferred_element_type=jnp.float32) + qkv_b_ref[layer])

        def stack_heads(m):
            # (BS, HIDDEN) -> (HEADS*BS, HEAD_DIM), head-major row groups
            return jnp.concatenate(
                [m[:, h * HEAD_DIM:(h + 1) * HEAD_DIM] for h in range(HEADS)], axis=0)

        q = stack_heads(qkv[:, :HIDDEN])                   # 1/sqrt(d) folded into W_q
        k = stack_heads(qkv[:, HIDDEN:2 * HIDDEN])
        v = stack_heads(qkv[:, 2 * HIDDEN:])

        # one fused score matmul over all (head, batch) groups, block-masked
        s = jax.lax.dot_general(q, k, (((1,), (1,)), ((), ())),
                                preferred_element_type=jnp.float32)       # (H*BS, H*BS)
        s = s + attn_bias
        s = s - jnp.max(s, axis=-1, keepdims=True)
        p = jnp.exp(s)
        # divide on the EUP (use approx=False for bit-parity with PyTorch softmax)
        p = p * pl.reciprocal(jnp.sum(p, axis=-1, keepdims=True), approx=True)
        o = jnp.dot(p, v, preferred_element_type=jnp.float32)             # (H*BS, hd)

        # re-concatenate heads along lanes, then ONE out-projection matmul
        o_cat = jnp.concatenate([o[h * BS:(h + 1) * BS, :] for h in range(HEADS)],
                                axis=1)                                   # (BS, HIDDEN)
        x = x + (jnp.dot(o_cat, out_wt_ref[layer],
                         preferred_element_type=jnp.float32) + out_b_ref[layer])

        # --- MLP block (pre-LN, exact erf-GELU, residual fused in) ---
        y = _layernorm_rows(x, ln2_g_ref[layer], ln2_b_ref[layer])
        h1 = _gelu_exact(jnp.dot(y, w1t_ref[layer],
                                 preferred_element_type=jnp.float32) + b1_ref[layer])
        x = x + (jnp.dot(h1, w2t_ref[layer],
                         preferred_element_type=jnp.float32) + b2_ref[layer])

    # ---- epilogue: final LN on all cls tokens at once + fc head, single store ----
    cls = jnp.concatenate([x[b * SEQ:b * SEQ + 1, :] for b in range(B)], axis=0)
    yc = _layernorm_rows(cls, lnf_g_ref[...], lnf_b_ref[...])
    logits_ref[...] = (jnp.dot(yc, fc_wt_ref[...],
                               preferred_element_type=jnp.float32) + fc_b_ref[...])


# ----------------------------- model -----------------------------
def init_params(key):
    keys = iter(jax.random.split(key, 64))

    def nrm(shape, scale=0.02):
        return jax.random.normal(next(keys), shape, jnp.float32) * scale

    conv_w = nrm((HIDDEN, CHANNELS * PATCH * PATCH))   # conv_proj flattened (out, C*p*p)
    conv_b = nrm((HIDDEN,))
    cls_token = nrm((1, 1, HIDDEN))
    pos_emb = nrm((1, SEQ, HIDDEN))

    # Device layout: pre-transposed weights (in, out), (1, N) bias rows, per-layer
    # params stacked on a leading LAYERS axis, class token pre-added into positional
    # row 0, 1/sqrt(head_dim) folded into the q slice of in_proj.
    qscale = 1.0 / float(HEAD_DIM) ** 0.5
    seq_bias = pos_emb[0].at[0].add(cls_token[0, 0])   # (SEQ, HIDDEN)

    in_wt, in_b, out_wt, out_b = [], [], [], []
    w1t, b1, w2t, b2 = [], [], [], []
    for _ in range(LAYERS):
        w_qkv = nrm((3 * HIDDEN, HIDDEN))
        b_qkv = nrm((3 * HIDDEN,))
        w_qkv = w_qkv.at[:HIDDEN].multiply(qscale)      # fold attention scale into q
        b_qkv = b_qkv.at[:HIDDEN].multiply(qscale)
        in_wt.append(w_qkv.T)
        in_b.append(b_qkv.reshape(1, 3 * HIDDEN))
        w_o, b_o = nrm((HIDDEN, HIDDEN)), nrm((HIDDEN,))
        out_wt.append(w_o.T)
        out_b.append(b_o.reshape(1, HIDDEN))
        w_1, b_1 = nrm((MLP, HIDDEN)), nrm((MLP,))
        w_2, b_2 = nrm((HIDDEN, MLP)), nrm((HIDDEN,))
        w1t.append(w_1.T)
        b1.append(b_1.reshape(1, MLP))
        w2t.append(w_2.T)
        b2.append(b_2.reshape(1, HIDDEN))

    fc_w, fc_bias = nrm((NUM_CLASSES, HIDDEN)), jnp.zeros((NUM_CLASSES,), jnp.float32)
    fc_wt = jnp.zeros((HIDDEN, NUM_CLASSES_PAD), jnp.float32).at[:, :NUM_CLASSES].set(fc_w.T)
    fc_b_pad = jnp.zeros((1, NUM_CLASSES_PAD), jnp.float32).at[0, :NUM_CLASSES].set(fc_bias)

    return dict(
        conv_wt=conv_w.T,                               # (C*P*P, HIDDEN)
        conv_b=conv_b.reshape(1, HIDDEN),
        seq_bias=seq_bias,                              # (SEQ, HIDDEN)
        ln1_g=jnp.ones((LAYERS, 1, HIDDEN), jnp.float32),
        ln1_b=jnp.zeros((LAYERS, 1, HIDDEN), jnp.float32),
        in_proj_wt=jnp.stack(in_wt),                    # (LAYERS, HIDDEN, 3*HIDDEN)
        in_proj_b=jnp.stack(in_b),                      # (LAYERS, 1, 3*HIDDEN)
        out_proj_wt=jnp.stack(out_wt),                  # (LAYERS, HIDDEN, HIDDEN)
        out_proj_b=jnp.stack(out_b),                    # (LAYERS, 1, HIDDEN)
        ln2_g=jnp.ones((LAYERS, 1, HIDDEN), jnp.float32),
        ln2_b=jnp.zeros((LAYERS, 1, HIDDEN), jnp.float32),
        mlp_w1t=jnp.stack(w1t),                         # (LAYERS, HIDDEN, MLP)
        mlp_b1=jnp.stack(b1),                           # (LAYERS, 1, MLP)
        mlp_w2t=jnp.stack(w2t),                         # (LAYERS, MLP, HIDDEN)
        mlp_b2=jnp.stack(b2),                           # (LAYERS, 1, HIDDEN)
        lnf_g=jnp.ones((1, HIDDEN), jnp.float32),
        lnf_b=jnp.zeros((1, HIDDEN), jnp.float32),
        fc_wt=fc_wt,                                    # (HIDDEN, NUM_CLASSES_PAD)
        fc_b=fc_b_pad,                                  # (1, NUM_CLASSES_PAD)
    )


@jax.jit
def transformer_model_forward(params, x):
    """x: (B, C, IMG, IMG) NCHW -> logits (B, NUM_CLASSES)."""
    B = x.shape[0]
    nh = nw = IMG // PATCH

    # conv_proj (kernel == stride == PATCH) as an unfold; its matmul runs in-kernel.
    patches = x.reshape(B, CHANNELS, nh, PATCH, nw, PATCH)
    patches = patches.transpose(0, 2, 4, 1, 3, 5).reshape(
        B * NP, CHANNELS * PATCH * PATCH)

    # additive block-diagonal attention mask over the HEADS*B (head, batch) groups
    gs = HEADS * B * SEQ
    gid = jnp.arange(gs, dtype=jnp.int32) // SEQ
    attn_bias = jnp.where(gid[:, None] == gid[None, :],
                          0.0, NEG_INF).astype(jnp.float32)              # (gs, gs)

    p = params
    names = ("conv_wt", "conv_b", "seq_bias",
             "ln1_g", "ln1_b", "in_proj_wt", "in_proj_b",
             "out_proj_wt", "out_proj_b", "ln2_g", "ln2_b",
             "mlp_w1t", "mlp_b1", "mlp_w2t", "mlp_b2",
             "lnf_g", "lnf_b", "fc_wt", "fc_b")
    args = (patches, attn_bias) + tuple(p[n] for n in names)

    # Single invocation, no grid: every operand (~200 KiB total) is VMEM-resident,
    # the whole forward (patch-embed -> L layers -> final LN -> fc) runs fused.
    logits_pad = pl.pallas_call(
        functools.partial(_vit_kernel, B),
        out_shape=jax.ShapeDtypeStruct((B, NUM_CLASSES_PAD), jnp.float32),
    )(*args)

    return logits_pad[:, :NUM_CLASSES]


if __name__ == "__main__":
    key = jax.random.PRNGKey(0)
    pkey, xkey = jax.random.split(key)
    params = init_params(pkey)
    # TODO(synk): pretrained vit_b_16 weights cannot be loaded here (no file/network
    # access); params are deterministic synthetic values with identical structure.
    x = jax.random.normal(xkey, (2, CHANNELS, IMG, IMG), jnp.float32)

    logits = transformer_model_forward(params, x)
    logits = jax.block_until_ready(logits)
    assert logits.shape == (2, NUM_CLASSES)
    assert bool(jnp.all(jnp.isfinite(logits)))
    print("KERNEL_OK")
</pallas_src>

<mosaic_0001>
module attributes {stable_mosaic.version = 11 : i64} {
  func.func @_vit_kernel(%arg0: memref<8x768xf32, #tpu.memory_space<vmem>>, %arg1: memref<40x40xf32, #tpu.memory_space<vmem>>, %arg2: memref<768x32xf32, #tpu.memory_space<vmem>>, %arg3: memref<1x32xf32, #tpu.memory_space<vmem>>, %arg4: memref<5x32xf32, #tpu.memory_space<vmem>>, %arg5: memref<2x1x32xf32, #tpu.memory_space<vmem>>, %arg6: memref<2x1x32xf32, #tpu.memory_space<vmem>>, %arg7: memref<2x32x96xf32, #tpu.memory_space<vmem>>, %arg8: memref<2x1x96xf32, #tpu.memory_space<vmem>>, %arg9: memref<2x32x32xf32, #tpu.memory_space<vmem>>, %arg10: memref<2x1x32xf32, #tpu.memory_space<vmem>>, %arg11: memref<2x1x32xf32, #tpu.memory_space<vmem>>, %arg12: memref<2x1x32xf32, #tpu.memory_space<vmem>>, %arg13: memref<2x32x64xf32, #tpu.memory_space<vmem>>, %arg14: memref<2x1x64xf32, #tpu.memory_space<vmem>>, %arg15: memref<2x64x32xf32, #tpu.memory_space<vmem>>, %arg16: memref<2x1x32xf32, #tpu.memory_space<vmem>>, %arg17: memref<1x32xf32, #tpu.memory_space<vmem>>, %arg18: memref<1x32xf32, #tpu.memory_space<vmem>>, %arg19: memref<32x128xf32, #tpu.memory_space<vmem>>, %arg20: memref<1x128xf32, #tpu.memory_space<vmem>>, %arg21: memref<2x128xf32, #tpu.memory_space<vmem>>) attributes {dimension_semantics = [], scalar_prefetch = 0 : i64, scratch_operands = 0 : i64, tpu.core_type = #tpu.core_type<tc>} {
    %c0 = arith.constant 0 : index
    %c0_0 = arith.constant 0 : index
    %0 = vector.load %arg0[%c0, %c0_0] : memref<8x768xf32, #tpu.memory_space<vmem>>, vector<8x768xf32>
    %c0_1 = arith.constant 0 : index
    %c0_2 = arith.constant 0 : index
    %1 = vector.load %arg2[%c0_1, %c0_2] : memref<768x32xf32, #tpu.memory_space<vmem>>, vector<768x32xf32>
    %cst = arith.constant dense<0.000000e+00> : vector<8x32xf32>
    %2 = tpu.matmul %0, %1, %cst {dimension_numbers = #tpu.dot_dimension_numbers<[1], [0], [0], [1], [0, 0, 1, 1], [], []>} : vector<8x768xf32>, vector<768x32xf32>, vector<8x32xf32> -> vector<8x32xf32>
    %c0_3 = arith.constant 0 : index
    %c0_4 = arith.constant 0 : index
    %3 = vector.load %arg3[%c0_3, %c0_4] : memref<1x32xf32, #tpu.memory_space<vmem>>, vector<1x32xf32>
    %4 = vector.broadcast %3 : vector<1x32xf32> to vector<8x32xf32>
    %5 = arith.addf %2, %4 : vector<8x32xf32>
    %c0_5 = arith.constant 0 : index
    %c0_6 = arith.constant 0 : index
    %6 = vector.load %arg4[%c0_5, %c0_6] : memref<5x32xf32, #tpu.memory_space<vmem>>, vector<1x32xf32>
    %7 = vector.extract_strided_slice %5 {offsets = [0, 0], sizes = [4, 32], strides = [1, 1]} : vector<8x32xf32> to vector<4x32xf32>
    %c1 = arith.constant 1 : index
    %c0_7 = arith.constant 0 : index
    %8 = vector.load %arg4[%c1, %c0_7] : memref<5x32xf32, #tpu.memory_space<vmem>>, vector<4x32xf32>
    %9 = arith.addf %7, %8 : vector<4x32xf32>
    %c0_8 = arith.constant 0 : index
    %c0_9 = arith.constant 0 : index
    %10 = vector.load %arg4[%c0_8, %c0_9] : memref<5x32xf32, #tpu.memory_space<vmem>>, vector<1x32xf32>
    %11 = vector.extract_strided_slice %5 {offsets = [4, 0], sizes = [4, 32], strides = [1, 1]} : vector<8x32xf32> to vector<4x32xf32>
    %c1_10 = arith.constant 1 : index
    %c0_11 = arith.constant 0 : index
    %12 = vector.load %arg4[%c1_10, %c0_11] : memref<5x32xf32, #tpu.memory_space<vmem>>, vector<4x32xf32>
    %13 = arith.addf %11, %12 : vector<4x32xf32>
    %14 = tpu.concatenate %6, %9, %10, %13 in 0 : vector<1x32xf32>, vector<4x32xf32>, vector<1x32xf32>, vector<4x32xf32> -> vector<10x32xf32>
    %c0_12 = arith.constant 0 : index
    %c0_13 = arith.constant 0 : index
    %15 = vector.load %arg1[%c0_12, %c0_13] : memref<40x40xf32, #tpu.memory_space<vmem>>, vector<40x40xf32>
    %c0_14 = arith.constant 0 : index
    %c0_15 = arith.constant 0 : index
    %c0_16 = arith.constant 0 : index
    %16 = vector.load %arg5[%c0_14, %c0_15, %c0_16] : memref<2x1x32xf32, #tpu.memory_space<vmem>>, vector<1x1x32xf32>
    %17 = vector.shape_cast %16 : vector<1x1x32xf32> to vector<1x32xf32>
    %c0_17 = arith.constant 0 : index
    %c0_18 = arith.constant 0 : index
    %c0_19 = arith.constant 0 : index
    %18 = vector.load %arg6[%c0_17, %c0_18, %c0_19] : memref<2x1x32xf32, #tpu.memory_space<vmem>>, vector<1x1x32xf32>
    %19 = vector.shape_cast %18 : vector<1x1x32xf32> to vector<1x32xf32>
    %cst_20 = arith.constant dense<0.000000e+00> : vector<10xf32>
    %20 = vector.multi_reduction <add>, %14, %cst_20 [1] : vector<10x32xf32> to vector<10xf32>
    %21 = vector.shape_cast %20 : vector<10xf32> to vector<10x1xf32>
    %cst_21 = arith.constant 3.200000e+01 : f32
    %22 = vector.broadcast %cst_21 : f32 to vector<10x1xf32>
    %23 = arith.divf %21, %22 : vector<10x1xf32>
    %24 = vector.broadcast %23 : vector<10x1xf32> to vector<10x32xf32>
    %25 = arith.subf %14, %24 : vector<10x32xf32>
    %26 = arith.mulf %25, %25 : vector<10x32xf32>
    %cst_22 = arith.constant dense<0.000000e+00> : vector<10xf32>
    %27 = vector.multi_reduction <add>, %26, %cst_22 [1] : vector<10x32xf32> to vector<10xf32>
    %28 = vector.shape_cast %27 : vector<10xf32> to vector<10x1xf32>
    %cst_23 = arith.constant 3.200000e+01 : f32
    %29 = vector.broadcast %cst_23 : f32 to vector<10x1xf32>
    %30 = arith.divf %28, %29 : vector<10x1xf32>
    %31 = vector.broadcast %23 : vector<10x1xf32> to vector<10x32xf32>
    %32 = arith.subf %14, %31 : vector<10x32xf32>
    %cst_24 = arith.constant 9.99999997E-7 : f32
    %33 = vector.broadcast %cst_24 : f32 to vector<10x1xf32>
    %34 = arith.addf %30, %33 : vector<10x1xf32>
    %35 = math.rsqrt %34 : vector<10x1xf32>
    %36 = vector.broadcast %35 : vector<10x1xf32> to vector<10x32xf32>
    %37 = arith.mulf %32, %36 : vector<10x32xf32>
    %38 = vector.broadcast %17 : vector<1x32xf32> to vector<10x32xf32>
    %39 = arith.mulf %37, %38 : vector<10x32xf32>
    %40 = vector.broadcast %19 : vector<1x32xf32> to vector<10x32xf32>
    %41 = arith.addf %39, %40 : vector<10x32xf32>
    %c0_25 = arith.constant 0 : index
    %c0_26 = arith.constant 0 : index
    %c0_27 = arith.constant 0 : index
    %42 = vector.load %arg7[%c0_25, %c0_26, %c0_27] : memref<2x32x96xf32, #tpu.memory_space<vmem>>, vector<1x32x96xf32>
    %43 = vector.shape_cast %42 : vector<1x32x96xf32> to vector<32x96xf32>
    %cst_28 = arith.constant dense<0.000000e+00> : vector<10x96xf32>
    %44 = tpu.matmul %41, %43, %cst_28 {dimension_numbers = #tpu.dot_dimension_numbers<[1], [0], [0], [1], [0, 0, 1, 1], [], []>} : vector<10x32xf32>, vector<32x96xf32>, vector<10x96xf32> -> vector<10x96xf32>
    %c0_29 = arith.constant 0 : index
    %c0_30 = arith.constant 0 : index
    %c0_31 = arith.constant 0 : index
    %45 = vector.load %arg8[%c0_29, %c0_30, %c0_31] : memref<2x1x96xf32, #tpu.memory_space<vmem>>, vector<1x1x96xf32>
    %46 = vector.shape_cast %45 : vector<1x1x96xf32> to vector<1x96xf32>
    %47 = vector.broadcast %46 : vector<1x96xf32> to vector<10x96xf32>
    %48 = arith.addf %44, %47 : vector<10x96xf32>
    %49 = vector.extract_strided_slice %48 {offsets = [0, 0], sizes = [10, 32], strides = [1, 1]} : vector<10x96xf32> to vector<10x32xf32>
    %50 = vector.extract_strided_slice %49 {offsets = [0, 0], sizes = [10, 8], strides = [1, 1]} : vector<10x32xf32> to vector<10x8xf32>
    %51 = vector.extract_strided_slice %49 {offsets = [0, 8], sizes = [10, 8], strides = [1, 1]} : vector<10x32xf32> to vector<10x8xf32>
    %52 = vector.extract_strided_slice %49 {offsets = [0, 16], sizes = [10, 8], strides = [1, 1]} : vector<10x32xf32> to vector<10x8xf32>
    %53 = vector.extract_strided_slice %49 {offsets = [0, 24], sizes = [10, 8], strides = [1, 1]} : vector<10x32xf32> to vector<10x8xf32>
    %54 = tpu.concatenate %50, %51, %52, %53 in 0 : vector<10x8xf32>, vector<10x8xf32>, vector<10x8xf32>, vector<10x8xf32> -> vector<40x8xf32>
    %55 = vector.extract_strided_slice %48 {offsets = [0, 32], sizes = [10, 32], strides = [1, 1]} : vector<10x96xf32> to vector<10x32xf32>
    %56 = vector.extract_strided_slice %55 {offsets = [0, 0], sizes = [10, 8], strides = [1, 1]} : vector<10x32xf32> to vector<10x8xf32>
    %57 = vector.extract_strided_slice %55 {offsets = [0, 8], sizes = [10, 8], strides = [1, 1]} : vector<10x32xf32> to vector<10x8xf32>
    %58 = vector.extract_strided_slice %55 {offsets = [0, 16], sizes = [10, 8], strides = [1, 1]} : vector<10x32xf32> to vector<10x8xf32>
    %59 = vector.extract_strided_slice %55 {offsets = [0, 24], sizes = [10, 8], strides = [1, 1]} : vector<10x32xf32> to vector<10x8xf32>
    %60 = tpu.concatenate %56, %57, %58, %59 in 0 : vector<10x8xf32>, vector<10x8xf32>, vector<10x8xf32>, vector<10x8xf32> -> vector<40x8xf32>
    %61 = vector.extract_strided_slice %48 {offsets = [0, 64], sizes = [10, 32], strides = [1, 1]} : vector<10x96xf32> to vector<10x32xf32>
    %62 = vector.extract_strided_slice %61 {offsets = [0, 0], sizes = [10, 8], strides = [1, 1]} : vector<10x32xf32> to vector<10x8xf32>
    %63 = vector.extract_strided_slice %61 {offsets = [0, 8], sizes = [10, 8], strides = [1, 1]} : vector<10x32xf32> to vector<10x8xf32>
    %64 = vector.extract_strided_slice %61 {offsets = [0, 16], sizes = [10, 8], strides = [1, 1]} : vector<10x32xf32> to vector<10x8xf32>
    %65 = vector.extract_strided_slice %61 {offsets = [0, 24], sizes = [10, 8], strides = [1, 1]} : vector<10x32xf32> to vector<10x8xf32>
    %66 = tpu.concatenate %62, %63, %64, %65 in 0 : vector<10x8xf32>, vector<10x8xf32>, vector<10x8xf32>, vector<10x8xf32> -> vector<40x8xf32>
    %cst_32 = arith.constant dense<0.000000e+00> : vector<40x40xf32>
    %67 = tpu.matmul %54, %60, %cst_32 {dimension_numbers = #tpu.dot_dimension_numbers<[1], [1], [0], [0], [0, 0, 1, 0], [], []>} : vector<40x8xf32>, vector<40x8xf32>, vector<40x40xf32> -> vector<40x40xf32>
    %68 = arith.addf %67, %15 : vector<40x40xf32>
    %cst_33 = arith.constant dense<0xFF800000> : vector<40xf32>
    %69 = vector.multi_reduction <maximumf>, %68, %cst_33 [1] : vector<40x40xf32> to vector<40xf32>
    %70 = vector.shape_cast %69 : vector<40xf32> to vector<40x1xf32>
    %71 = vector.broadcast %70 : vector<40x1xf32> to vector<40x40xf32>
    %72 = arith.subf %68, %71 : vector<40x40xf32>
    %73 = math.exp %72 : vector<40x40xf32>
    %cst_34 = arith.constant dense<0.000000e+00> : vector<40xf32>
    %74 = vector.multi_reduction <add>, %73, %cst_34 [1] : vector<40x40xf32> to vector<40xf32>
    %75 = vector.shape_cast %74 : vector<40xf32> to vector<40x1xf32>
    %76 = tpu.reciprocal %75 {approx = true} : vector<40x1xf32> -> vector<40x1xf32>
    %77 = vector.broadcast %76 : vector<40x1xf32> to vector<40x40xf32>
    %78 = arith.mulf %73, %77 : vector<40x40xf32>
    %cst_35 = arith.constant dense<0.000000e+00> : vector<40x8xf32>
    %79 = tpu.matmul %78, %66, %cst_35 {dimension_numbers = #tpu.dot_dimension_numbers<[1], [0], [0], [1], [0, 0, 1, 1], [], []>} : vector<40x40xf32>, vector<40x8xf32>, vector<40x8xf32> -> vector<40x8xf32>
    %80 = vector.extract_strided_slice %79 {offsets = [0, 0], sizes = [10, 8], strides = [1, 1]} : vector<40x8xf32> to vector<10x8xf32>
    %81 = vector.extract_strided_slice %79 {offsets = [10, 0], sizes = [10, 8], strides = [1, 1]} : vector<40x8xf32> to vector<10x8xf32>
    %82 = vector.extract_strided_slice %79 {offsets = [20, 0], sizes = [10, 8], strides = [1, 1]} : vector<40x8xf32> to vector<10x8xf32>
    %83 = vector.extract_strided_slice %79 {offsets = [30, 0], sizes = [10, 8], strides = [1, 1]} : vector<40x8xf32> to vector<10x8xf32>
    %84 = tpu.concatenate %80, %81, %82, %83 in 1 : vector<10x8xf32>, vector<10x8xf32>, vector<10x8xf32>, vector<10x8xf32> -> vector<10x32xf32>
    %c0_36 = arith.constant 0 : index
    %c0_37 = arith.constant 0 : index
    %c0_38 = arith.constant 0 : index
    %85 = vector.load %arg9[%c0_36, %c0_37, %c0_38] : memref<2x32x32xf32, #tpu.memory_space<vmem>>, vector<1x32x32xf32>
    %86 = vector.shape_cast %85 : vector<1x32x32xf32> to vector<32x32xf32>
    %cst_39 = arith.constant dense<0.000000e+00> : vector<10x32xf32>
    %87 = tpu.matmul %84, %86, %cst_39 {dimension_numbers = #tpu.dot_dimension_numbers<[1], [0], [0], [1], [0, 0, 1, 1], [], []>} : vector<10x32xf32>, vector<32x32xf32>, vector<10x32xf32> -> vector<10x32xf32>
    %c0_40 = arith.constant 0 : index
    %c0_41 = arith.constant 0 : index
    %c0_42 = arith.constant 0 : index
    %88 = vector.load %arg10[%c0_40, %c0_41, %c0_42] : memref<2x1x32xf32, #tpu.memory_space<vmem>>, vector<1x1x32xf32>
    %89 = vector.shape_cast %88 : vector<1x1x32xf32> to vector<1x32xf32>
    %90 = vector.broadcast %89 : vector<1x32xf32> to vector<10x32xf32>
    %91 = arith.addf %87, %90 : vector<10x32xf32>
    %92 = arith.addf %14, %91 : vector<10x32xf32>
    %c0_43 = arith.constant 0 : index
    %c0_44 = arith.constant 0 : index
    %c0_45 = arith.constant 0 : index
    %93 = vector.load %arg11[%c0_43, %c0_44, %c0_45] : memref<2x1x32xf32, #tpu.memory_space<vmem>>, vector<1x1x32xf32>
    %94 = vector.shape_cast %93 : vector<1x1x32xf32> to vector<1x32xf32>
    %c0_46 = arith.constant 0 : index
    %c0_47 = arith.constant 0 : index
    %c0_48 = arith.constant 0 : index
    %95 = vector.load %arg12[%c0_46, %c0_47, %c0_48] : memref<2x1x32xf32, #tpu.memory_space<vmem>>, vector<1x1x32xf32>
    %96 = vector.shape_cast %95 : vector<1x1x32xf32> to vector<1x32xf32>
    %cst_49 = arith.constant dense<0.000000e+00> : vector<10xf32>
    %97 = vector.multi_reduction <add>, %92, %cst_49 [1] : vector<10x32xf32> to vector<10xf32>
    %98 = vector.shape_cast %97 : vector<10xf32> to vector<10x1xf32>
    %cst_50 = arith.constant 3.200000e+01 : f32
    %99 = vector.broadcast %cst_50 : f32 to vector<10x1xf32>
    %100 = arith.divf %98, %99 : vector<10x1xf32>
    %101 = vector.broadcast %100 : vector<10x1xf32> to vector<10x32xf32>
    %102 = arith.subf %92, %101 : vector<10x32xf32>
    %103 = arith.mulf %102, %102 : vector<10x32xf32>
    %cst_51 = arith.constant dense<0.000000e+00> : vector<10xf32>
    %104 = vector.multi_reduction <add>, %103, %cst_51 [1] : vector<10x32xf32> to vector<10xf32>
    %105 = vector.shape_cast %104 : vector<10xf32> to vector<10x1xf32>
    %cst_52 = arith.constant 3.200000e+01 : f32
    %106 = vector.broadcast %cst_52 : f32 to vector<10x1xf32>
    %107 = arith.divf %105, %106 : vector<10x1xf32>
    %108 = vector.broadcast %100 : vector<10x1xf32> to vector<10x32xf32>
    %109 = arith.subf %92, %108 : vector<10x32xf32>
    %cst_53 = arith.constant 9.99999997E-7 : f32
    %110 = vector.broadcast %cst_53 : f32 to vector<10x1xf32>
    %111 = arith.addf %107, %110 : vector<10x1xf32>
    %112 = math.rsqrt %111 : vector<10x1xf32>
    %113 = vector.broadcast %112 : vector<10x1xf32> to vector<10x32xf32>
    %114 = arith.mulf %109, %113 : vector<10x32xf32>
    %115 = vector.broadcast %94 : vector<1x32xf32> to vector<10x32xf32>
    %116 = arith.mulf %114, %115 : vector<10x32xf32>
    %117 = vector.broadcast %96 : vector<1x32xf32> to vector<10x32xf32>
    %118 = arith.addf %116, %117 : vector<10x32xf32>
    %c0_54 = arith.constant 0 : index
    %c0_55 = arith.constant 0 : index
    %c0_56 = arith.constant 0 : index
    %119 = vector.load %arg13[%c0_54, %c0_55, %c0_56] : memref<2x32x64xf32, #tpu.memory_space<vmem>>, vector<1x32x64xf32>
    %120 = vector.shape_cast %119 : vector<1x32x64xf32> to vector<32x64xf32>
    %cst_57 = arith.constant dense<0.000000e+00> : vector<10x64xf32>
    %121 = tpu.matmul %118, %120, %cst_57 {dimension_numbers = #tpu.dot_dimension_numbers<[1], [0], [0], [1], [0, 0, 1, 1], [], []>} : vector<10x32xf32>, vector<32x64xf32>, vector<10x64xf32> -> vector<10x64xf32>
    %c0_58 = arith.constant 0 : index
    %c0_59 = arith.constant 0 : index
    %c0_60 = arith.constant 0 : index
    %122 = vector.load %arg14[%c0_58, %c0_59, %c0_60] : memref<2x1x64xf32, #tpu.memory_space<vmem>>, vector<1x1x64xf32>
    %123 = vector.shape_cast %122 : vector<1x1x64xf32> to vector<1x64xf32>
    %124 = vector.broadcast %123 : vector<1x64xf32> to vector<10x64xf32>
    %125 = arith.addf %121, %124 : vector<10x64xf32>
    %cst_61 = arith.constant 5.000000e-01 : f32
    %126 = vector.broadcast %cst_61 : f32 to vector<10x64xf32>
    %127 = arith.mulf %126, %125 : vector<10x64xf32>
    %cst_62 = arith.constant 0.707106769 : f32
    %128 = vector.broadcast %cst_62 : f32 to vector<10x64xf32>
    %129 = arith.mulf %125, %128 : vector<10x64xf32>
    %130 = math.erf %129 : vector<10x64xf32>
    %cst_63 = arith.constant 1.000000e+00 : f32
    %131 = vector.broadcast %cst_63 : f32 to vector<10x64xf32>
    %132 = arith.addf %131, %130 : vector<10x64xf32>
    %133 = arith.mulf %127, %132 : vector<10x64xf32>
    %c0_64 = arith.constant 0 : index
    %c0_65 = arith.constant 0 : index
    %c0_66 = arith.constant 0 : index
    %134 = vector.load %arg15[%c0_64, %c0_65, %c0_66] : memref<2x64x32xf32, #tpu.memory_space<vmem>>, vector<1x64x32xf32>
    %135 = vector.shape_cast %134 : vector<1x64x32xf32> to vector<64x32xf32>
    %cst_67 = arith.constant dense<0.000000e+00> : vector<10x32xf32>
    %136 = tpu.matmul %133, %135, %cst_67 {dimension_numbers = #tpu.dot_dimension_numbers<[1], [0], [0], [1], [0, 0, 1, 1], [], []>} : vector<10x64xf32>, vector<64x32xf32>, vector<10x32xf32> -> vector<10x32xf32>
    %c0_68 = arith.constant 0 : index
    %c0_69 = arith.constant 0 : index
    %c0_70 = arith.constant 0 : index
    %137 = vector.load %arg16[%c0_68, %c0_69, %c0_70] : memref<2x1x32xf32, #tpu.memory_space<vmem>>, vector<1x1x32xf32>
    %138 = vector.shape_cast %137 : vector<1x1x32xf32> to vector<1x32xf32>
    %139 = vector.broadcast %138 : vector<1x32xf32> to vector<10x32xf32>
    %140 = arith.addf %136, %139 : vector<10x32xf32>
    %141 = arith.addf %92, %140 : vector<10x32xf32>
    %c1_71 = arith.constant 1 : index
    %c0_72 = arith.constant 0 : index
    %c0_73 = arith.constant 0 : index
    %142 = vector.load %arg5[%c1_71, %c0_72, %c0_73] : memref<2x1x32xf32, #tpu.memory_space<vmem>>, vector<1x1x32xf32>
    %143 = vector.shape_cast %142 : vector<1x1x32xf32> to vector<1x32xf32>
    %c1_74 = arith.constant 1 : index
    %c0_75 = arith.constant 0 : index
    %c0_76 = arith.constant 0 : index
    %144 = vector.load %arg6[%c1_74, %c0_75, %c0_76] : memref<2x1x32xf32, #tpu.memory_space<vmem>>, vector<1x1x32xf32>
    %145 = vector.shape_cast %144 : vector<1x1x32xf32> to vector<1x32xf32>
    %cst_77 = arith.constant dense<0.000000e+00> : vector<10xf32>
    %146 = vector.multi_reduction <add>, %141, %cst_77 [1] : vector<10x32xf32> to vector<10xf32>
    %147 = vector.shape_cast %146 : vector<10xf32> to vector<10x1xf32>
    %cst_78 = arith.constant 3.200000e+01 : f32
    %148 = vector.broadcast %cst_78 : f32 to vector<10x1xf32>
    %149 = arith.divf %147, %148 : vector<10x1xf32>
    %150 = vector.broadcast %149 : vector<10x1xf32> to vector<10x32xf32>
    %151 = arith.subf %141, %150 : vector<10x32xf32>
    %152 = arith.mulf %151, %151 : vector<10x32xf32>
    %cst_79 = arith.constant dense<0.000000e+00> : vector<10xf32>
    %153 = vector.multi_reduction <add>, %152, %cst_79 [1] : vector<10x32xf32> to vector<10xf32>
    %154 = vector.shape_cast %153 : vector<10xf32> to vector<10x1xf32>
    %cst_80 = arith.constant 3.200000e+01 : f32
    %155 = vector.broadcast %cst_80 : f32 to vector<10x1xf32>
    %156 = arith.divf %154, %155 : vector<10x1xf32>
    %157 = vector.broadcast %149 : vector<10x1xf32> to vector<10x32xf32>
    %158 = arith.subf %141, %157 : vector<10x32xf32>
    %cst_81 = arith.constant 9.99999997E-7 : f32
    %159 = vector.broadcast %cst_81 : f32 to vector<10x1xf32>
    %160 = arith.addf %156, %159 : vector<10x1xf32>
    %161 = math.rsqrt %160 : vector<10x1xf32>
    %162 = vector.broadcast %161 : vector<10x1xf32> to vector<10x32xf32>
    %163 = arith.mulf %158, %162 : vector<10x32xf32>
    %164 = vector.broadcast %143 : vector<1x32xf32> to vector<10x32xf32>
    %165 = arith.mulf %163, %164 : vector<10x32xf32>
    %166 = vector.broadcast %145 : vector<1x32xf32> to vector<10x32xf32>
    %167 = arith.addf %165, %166 : vector<10x32xf32>
    %c1_82 = arith.constant 1 : index
    %c0_83 = arith.constant 0 : index
    %c0_84 = arith.constant 0 : index
    %168 = vector.load %arg7[%c1_82, %c0_83, %c0_84] : memref<2x32x96xf32, #tpu.memory_space<vmem>>, vector<1x32x96xf32>
    %169 = vector.shape_cast %168 : vector<1x32x96xf32> to vector<32x96xf32>
    %cst_85 = arith.constant dense<0.000000e+00> : vector<10x96xf32>
    %170 = tpu.matmul %167, %169, %cst_85 {dimension_numbers = #tpu.dot_dimension_numbers<[1], [0], [0], [1], [0, 0, 1, 1], [], []>} : vector<10x32xf32>, vector<32x96xf32>, vector<10x96xf32> -> vector<10x96xf32>
    %c1_86 = arith.constant 1 : index
    %c0_87 = arith.constant 0 : index
    %c0_88 = arith.constant 0 : index
    %171 = vector.load %arg8[%c1_86, %c0_87, %c0_88] : memref<2x1x96xf32, #tpu.memory_space<vmem>>, vector<1x1x96xf32>
    %172 = vector.shape_cast %171 : vector<1x1x96xf32> to vector<1x96xf32>
    %173 = vector.broadcast %172 : vector<1x96xf32> to vector<10x96xf32>
    %174 = arith.addf %170, %173 : vector<10x96xf32>
    %175 = vector.extract_strided_slice %174 {offsets = [0, 0], sizes = [10, 32], strides = [1, 1]} : vector<10x96xf32> to vector<10x32xf32>
    %176 = vector.extract_strided_slice %175 {offsets = [0, 0], sizes = [10, 8], strides = [1, 1]} : vector<10x32xf32> to vector<10x8xf32>
    %177 = vector.extract_strided_slice %175 {offsets = [0, 8], sizes = [10, 8], strides = [1, 1]} : vector<10x32xf32> to vector<10x8xf32>
    %178 = vector.extract_strided_slice %175 {offsets = [0, 16], sizes = [10, 8], strides = [1, 1]} : vector<10x32xf32> to vector<10x8xf32>
    %179 = vector.extract_strided_slice %175 {offsets = [0, 24], sizes = [10, 8], strides = [1, 1]} : vector<10x32xf32> to vector<10x8xf32>
    %180 = tpu.concatenate %176, %177, %178, %179 in 0 : vector<10x8xf32>, vector<10x8xf32>, vector<10x8xf32>, vector<10x8xf32> -> vector<40x8xf32>
    %181 = vector.extract_strided_slice %174 {offsets = [0, 32], sizes = [10, 32], strides = [1, 1]} : vector<10x96xf32> to vector<10x32xf32>
    %182 = vector.extract_strided_slice %181 {offsets = [0, 0], sizes = [10, 8], strides = [1, 1]} : vector<10x32xf32> to vector<10x8xf32>
    %183 = vector.extract_strided_slice %181 {offsets = [0, 8], sizes = [10, 8], strides = [1, 1]} : vector<10x32xf32> to vector<10x8xf32>
    %184 = vector.extract_strided_slice %181 {offsets = [0, 16], sizes = [10, 8], strides = [1, 1]} : vector<10x32xf32> to vector<10x8xf32>
    %185 = vector.extract_strided_slice %181 {offsets = [0, 24], sizes = [10, 8], strides = [1, 1]} : vector<10x32xf32> to vector<10x8xf32>
    %186 = tpu.concatenate %182, %183, %184, %185 in 0 : vector<10x8xf32>, vector<10x8xf32>, vector<10x8xf32>, vector<10x8xf32> -> vector<40x8xf32>
    %187 = vector.extract_strided_slice %174 {offsets = [0, 64], sizes = [10, 32], strides = [1, 1]} : vector<10x96xf32> to vector<10x32xf32>
    %188 = vector.extract_strided_slice %187 {offsets = [0, 0], sizes = [10, 8], strides = [1, 1]} : vector<10x32xf32> to vector<10x8xf32>
    %189 = vector.extract_strided_slice %187 {offsets = [0, 8], sizes = [10, 8], strides = [1, 1]} : vector<10x32xf32> to vector<10x8xf32>
    %190 = vector.extract_strided_slice %187 {offsets = [0, 16], sizes = [10, 8], strides = [1, 1]} : vector<10x32xf32> to vector<10x8xf32>
    %191 = vector.extract_strided_slice %187 {offsets = [0, 24], sizes = [10, 8], strides = [1, 1]} : vector<10x32xf32> to vector<10x8xf32>
    %192 = tpu.concatenate %188, %189, %190, %191 in 0 : vector<10x8xf32>, vector<10x8xf32>, vector<10x8xf32>, vector<10x8xf32> -> vector<40x8xf32>
    %cst_89 = arith.constant dense<0.000000e+00> : vector<40x40xf32>
    %193 = tpu.matmul %180, %186, %cst_89 {dimension_numbers = #tpu.dot_dimension_numbers<[1], [1], [0], [0], [0, 0, 1, 0], [], []>} : vector<40x8xf32>, vector<40x8xf32>, vector<40x40xf32> -> vector<40x40xf32>
    %194 = arith.addf %193, %15 : vector<40x40xf32>
    %cst_90 = arith.constant dense<0xFF800000> : vector<40xf32>
    %195 = vector.multi_reduction <maximumf>, %194, %cst_90 [1] : vector<40x40xf32> to vector<40xf32>
    %196 = vector.shape_cast %195 : vector<40xf32> to vector<40x1xf32>
    %197 = vector.broadcast %196 : vector<40x1xf32> to vector<40x40xf32>
    %198 = arith.subf %194, %197 : vector<40x40xf32>
    %199 = math.exp %198 : vector<40x40xf32>
    %cst_91 = arith.constant dense<0.000000e+00> : vector<40xf32>
    %200 = vector.multi_reduction <add>, %199, %cst_91 [1] : vector<40x40xf32> to vector<40xf32>
    %201 = vector.shape_cast %200 : vector<40xf32> to vector<40x1xf32>
    %202 = tpu.reciprocal %201 {approx = true} : vector<40x1xf32> -> vector<40x1xf32>
    %203 = vector.broadcast %202 : vector<40x1xf32> to vector<40x40xf32>
    %204 = arith.mulf %199, %203 : vector<40x40xf32>
    %cst_92 = arith.constant dense<0.000000e+00> : vector<40x8xf32>
    %205 = tpu.matmul %204, %192, %cst_92 {dimension_numbers = #tpu.dot_dimension_numbers<[1], [0], [0], [1], [0, 0, 1, 1], [], []>} : vector<40x40xf32>, vector<40x8xf32>, vector<40x8xf32> -> vector<40x8xf32>
    %206 = vector.extract_strided_slice %205 {offsets = [0, 0], sizes = [10, 8], strides = [1, 1]} : vector<40x8xf32> to vector<10x8xf32>
    %207 = vector.extract_strided_slice %205 {offsets = [10, 0], sizes = [10, 8], strides = [1, 1]} : vector<40x8xf32> to vector<10x8xf32>
    %208 = vector.extract_strided_slice %205 {offsets = [20, 0], sizes = [10, 8], strides = [1, 1]} : vector<40x8xf32> to vector<10x8xf32>
    %209 = vector.extract_strided_slice %205 {offsets = [30, 0], sizes = [10, 8], strides = [1, 1]} : vector<40x8xf32> to vector<10x8xf32>
    %210 = tpu.concatenate %206, %207, %208, %209 in 1 : vector<10x8xf32>, vector<10x8xf32>, vector<10x8xf32>, vector<10x8xf32> -> vector<10x32xf32>
    %c1_93 = arith.constant 1 : index
    %c0_94 = arith.constant 0 : index
    %c0_95 = arith.constant 0 : index
    %211 = vector.load %arg9[%c1_93, %c0_94, %c0_95] : memref<2x32x32xf32, #tpu.memory_space<vmem>>, vector<1x32x32xf32>
    %212 = vector.shape_cast %211 : vector<1x32x32xf32> to vector<32x32xf32>
    %cst_96 = arith.constant dense<0.000000e+00> : vector<10x32xf32>
    %213 = tpu.matmul %210, %212, %cst_96 {dimension_numbers = #tpu.dot_dimension_numbers<[1], [0], [0], [1], [0, 0, 1, 1], [], []>} : vector<10x32xf32>, vector<32x32xf32>, vector<10x32xf32> -> vector<10x32xf32>
    %c1_97 = arith.constant 1 : index
    %c0_98 = arith.constant 0 : index
    %c0_99 = arith.constant 0 : index
    %214 = vector.load %arg10[%c1_97, %c0_98, %c0_99] : memref<2x1x32xf32, #tpu.memory_space<vmem>>, vector<1x1x32xf32>
    %215 = vector.shape_cast %214 : vector<1x1x32xf32> to vector<1x32xf32>
    %216 = vector.broadcast %215 : vector<1x32xf32> to vector<10x32xf32>
    %217 = arith.addf %213, %216 : vector<10x32xf32>
    %218 = arith.addf %141, %217 : vector<10x32xf32>
    %c1_100 = arith.constant 1 : index
    %c0_101 = arith.constant 0 : index
    %c0_102 = arith.constant 0 : index
    %219 = vector.load %arg11[%c1_100, %c0_101, %c0_102] : memref<2x1x32xf32, #tpu.memory_space<vmem>>, vector<1x1x32xf32>
    %220 = vector.shape_cast %219 : vector<1x1x32xf32> to vector<1x32xf32>
    %c1_103 = arith.constant 1 : index
    %c0_104 = arith.constant 0 : index
    %c0_105 = arith.constant 0 : index
    %221 = vector.load %arg12[%c1_103, %c0_104, %c0_105] : memref<2x1x32xf32, #tpu.memory_space<vmem>>, vector<1x1x32xf32>
    %222 = vector.shape_cast %221 : vector<1x1x32xf32> to vector<1x32xf32>
    %cst_106 = arith.constant dense<0.000000e+00> : vector<10xf32>
    %223 = vector.multi_reduction <add>, %218, %cst_106 [1] : vector<10x32xf32> to vector<10xf32>
    %224 = vector.shape_cast %223 : vector<10xf32> to vector<10x1xf32>
    %cst_107 = arith.constant 3.200000e+01 : f32
    %225 = vector.broadcast %cst_107 : f32 to vector<10x1xf32>
    %226 = arith.divf %224, %225 : vector<10x1xf32>
    %227 = vector.broadcast %226 : vector<10x1xf32> to vector<10x32xf32>
    %228 = arith.subf %218, %227 : vector<10x32xf32>
    %229 = arith.mulf %228, %228 : vector<10x32xf32>
    %cst_108 = arith.constant dense<0.000000e+00> : vector<10xf32>
    %230 = vector.multi_reduction <add>, %229, %cst_108 [1] : vector<10x32xf32> to vector<10xf32>
    %231 = vector.shape_cast %230 : vector<10xf32> to vector<10x1xf32>
    %cst_109 = arith.constant 3.200000e+01 : f32
    %232 = vector.broadcast %cst_109 : f32 to vector<10x1xf32>
    %233 = arith.divf %231, %232 : vector<10x1xf32>
    %234 = vector.broadcast %226 : vector<10x1xf32> to vector<10x32xf32>
    %235 = arith.subf %218, %234 : vector<10x32xf32>
    %cst_110 = arith.constant 9.99999997E-7 : f32
    %236 = vector.broadcast %cst_110 : f32 to vector<10x1xf32>
    %237 = arith.addf %233, %236 : vector<10x1xf32>
    %238 = math.rsqrt %237 : vector<10x1xf32>
    %239 = vector.broadcast %238 : vector<10x1xf32> to vector<10x32xf32>
    %240 = arith.mulf %235, %239 : vector<10x32xf32>
    %241 = vector.broadcast %220 : vector<1x32xf32> to vector<10x32xf32>
    %242 = arith.mulf %240, %241 : vector<10x32xf32>
    %243 = vector.broadcast %222 : vector<1x32xf32> to vector<10x32xf32>
    %244 = arith.addf %242, %243 : vector<10x32xf32>
    %c1_111 = arith.constant 1 : index
    %c0_112 = arith.constant 0 : index
    %c0_113 = arith.constant 0 : index
    %245 = vector.load %arg13[%c1_111, %c0_112, %c0_113] : memref<2x32x64xf32, #tpu.memory_space<vmem>>, vector<1x32x64xf32>
    %246 = vector.shape_cast %245 : vector<1x32x64xf32> to vector<32x64xf32>
    %cst_114 = arith.constant dense<0.000000e+00> : vector<10x64xf32>
    %247 = tpu.matmul %244, %246, %cst_114 {dimension_numbers = #tpu.dot_dimension_numbers<[1], [0], [0], [1], [0, 0, 1, 1], [], []>} : vector<10x32xf32>, vector<32x64xf32>, vector<10x64xf32> -> vector<10x64xf32>
    %c1_115 = arith.constant 1 : index
    %c0_116 = arith.constant 0 : index
    %c0_117 = arith.constant 0 : index
    %248 = vector.load %arg14[%c1_115, %c0_116, %c0_117] : memref<2x1x64xf32, #tpu.memory_space<vmem>>, vector<1x1x64xf32>
    %249 = vector.shape_cast %248 : vector<1x1x64xf32> to vector<1x64xf32>
    %250 = vector.broadcast %249 : vector<1x64xf32> to vector<10x64xf32>
    %251 = arith.addf %247, %250 : vector<10x64xf32>
    %cst_118 = arith.constant 5.000000e-01 : f32
    %252 = vector.broadcast %cst_118 : f32 to vector<10x64xf32>
    %253 = arith.mulf %252, %251 : vector<10x64xf32>
    %cst_119 = arith.constant 0.707106769 : f32
    %254 = vector.broadcast %cst_119 : f32 to vector<10x64xf32>
    %255 = arith.mulf %251, %254 : vector<10x64xf32>
    %256 = math.erf %255 : vector<10x64xf32>
    %cst_120 = arith.constant 1.000000e+00 : f32
    %257 = vector.broadcast %cst_120 : f32 to vector<10x64xf32>
    %258 = arith.addf %257, %256 : vector<10x64xf32>
    %259 = arith.mulf %253, %258 : vector<10x64xf32>
    %c1_121 = arith.constant 1 : index
    %c0_122 = arith.constant 0 : index
    %c0_123 = arith.constant 0 : index
    %260 = vector.load %arg15[%c1_121, %c0_122, %c0_123] : memref<2x64x32xf32, #tpu.memory_space<vmem>>, vector<1x64x32xf32>
    %261 = vector.shape_cast %260 : vector<1x64x32xf32> to vector<64x32xf32>
    %cst_124 = arith.constant dense<0.000000e+00> : vector<10x32xf32>
    %262 = tpu.matmul %259, %261, %cst_124 {dimension_numbers = #tpu.dot_dimension_numbers<[1], [0], [0], [1], [0, 0, 1, 1], [], []>} : vector<10x64xf32>, vector<64x32xf32>, vector<10x32xf32> -> vector<10x32xf32>
    %c1_125 = arith.constant 1 : index
    %c0_126 = arith.constant 0 : index
    %c0_127 = arith.constant 0 : index
    %263 = vector.load %arg16[%c1_125, %c0_126, %c0_127] : memref<2x1x32xf32, #tpu.memory_space<vmem>>, vector<1x1x32xf32>
    %264 = vector.shape_cast %263 : vector<1x1x32xf32> to vector<1x32xf32>
    %265 = vector.broadcast %264 : vector<1x32xf32> to vector<10x32xf32>
    %266 = arith.addf %262, %265 : vector<10x32xf32>
    %267 = arith.addf %218, %266 : vector<10x32xf32>
    %268 = vector.extract_strided_slice %267 {offsets = [0, 0], sizes = [1, 32], strides = [1, 1]} : vector<10x32xf32> to vector<1x32xf32>
    %269 = vector.extract_strided_slice %267 {offsets = [5, 0], sizes = [1, 32], strides = [1, 1]} : vector<10x32xf32> to vector<1x32xf32>
    %270 = tpu.concatenate %268, %269 in 0 : vector<1x32xf32>, vector<1x32xf32> -> vector<2x32xf32>
    %c0_128 = arith.constant 0 : index
    %c0_129 = arith.constant 0 : index
    %271 = vector.load %arg17[%c0_128, %c0_129] : memref<1x32xf32, #tpu.memory_space<vmem>>, vector<1x32xf32>
    %c0_130 = arith.constant 0 : index
    %c0_131 = arith.constant 0 : index
    %272 = vector.load %arg18[%c0_130, %c0_131] : memref<1x32xf32, #tpu.memory_space<vmem>>, vector<1x32xf32>
    %cst_132 = arith.constant dense<0.000000e+00> : vector<2xf32>
    %273 = vector.multi_reduction <add>, %270, %cst_132 [1] : vector<2x32xf32> to vector<2xf32>
    %274 = vector.shape_cast %273 : vector<2xf32> to vector<2x1xf32>
    %cst_133 = arith.constant 3.200000e+01 : f32
    %275 = vector.broadcast %cst_133 : f32 to vector<2x1xf32>
    %276 = arith.divf %274, %275 : vector<2x1xf32>
    %277 = vector.broadcast %276 : vector<2x1xf32> to vector<2x32xf32>
    %278 = arith.subf %270, %277 : vector<2x32xf32>
    %279 = arith.mulf %278, %278 : vector<2x32xf32>
    %cst_134 = arith.constant dense<0.000000e+00> : vector<2xf32>
    %280 = vector.multi_reduction <add>, %279, %cst_134 [1] : vector<2x32xf32> to vector<2xf32>
    %281 = vector.shape_cast %280 : vector<2xf32> to vector<2x1xf32>
    %cst_135 = arith.constant 3.200000e+01 : f32
    %282 = vector.broadcast %cst_135 : f32 to vector<2x1xf32>
    %283 = arith.divf %281, %282 : vector<2x1xf32>
    %284 = vector.broadcast %276 : vector<2x1xf32> to vector<2x32xf32>
    %285 = arith.subf %270, %284 : vector<2x32xf32>
    %cst_136 = arith.constant 9.99999997E-7 : f32
    %286 = vector.broadcast %cst_136 : f32 to vector<2x1xf32>
    %287 = arith.addf %283, %286 : vector<2x1xf32>
    %288 = math.rsqrt %287 : vector<2x1xf32>
    %289 = vector.broadcast %288 : vector<2x1xf32> to vector<2x32xf32>
    %290 = arith.mulf %285, %289 : vector<2x32xf32>
    %291 = vector.broadcast %271 : vector<1x32xf32> to vector<2x32xf32>
    %292 = arith.mulf %290, %291 : vector<2x32xf32>
    %293 = vector.broadcast %272 : vector<1x32xf32> to vector<2x32xf32>
    %294 = arith.addf %292, %293 : vector<2x32xf32>
    %c0_137 = arith.constant 0 : index
    %c0_138 = arith.constant 0 : index
    %295 = vector.load %arg19[%c0_137, %c0_138] : memref<32x128xf32, #tpu.memory_space<vmem>>, vector<32x128xf32>
    %cst_139 = arith.constant dense<0.000000e+00> : vector<2x128xf32>
    %296 = tpu.matmul %294, %295, %cst_139 {dimension_numbers = #tpu.dot_dimension_numbers<[1], [0], [0], [1], [0, 0, 1, 1], [], []>} : vector<2x32xf32>, vector<32x128xf32>, vector<2x128xf32> -> vector<2x128xf32>
    %c0_140 = arith.constant 0 : index
    %c0_141 = arith.constant 0 : index
    %297 = vector.load %arg20[%c0_140, %c0_141] : memref<1x128xf32, #tpu.memory_space<vmem>>, vector<1x128xf32>
    %298 = vector.broadcast %297 : vector<1x128xf32> to vector<2x128xf32>
    %299 = arith.addf %296, %298 : vector<2x128xf32>
    %c0_142 = arith.constant 0 : index
    %c0_143 = arith.constant 0 : index
    %300 = vector.load %arg21[%c0_142, %c0_143] : memref<2x128xf32, #tpu.memory_space<vmem>>, vector<2x128xf32>
    tpu.vector_store %arg21[%c0_142, %c0_143], %299 {strides = array<i32>} : memref<2x128xf32, #tpu.memory_space<vmem>>, vector<2x128xf32>,
    return
  }
}

</mosaic_0001>

<bundles_post_ra>
// kernel: transformer_model_forward.1
= control target key start
LH: loop header
LB: loop body
LE: loop exit
PB: predicated region body
PF: predicated region fallthrough
CT: control target
= control target key end

     0   :  { %s4062_s0 = inlined_call_operand.vmem [shape: f32[8,768], index: 0, kind: input, shape index: {}]   ;;  %s4063_s1 = inlined_call_operand.vmem [shape: f32[40,40], index: 1, kind: input, shape index: {}]   ;;  %s4064_s2 = inlined_call_operand.vmem [shape: f32[768,32], index: 2, kind: input, shape index: {}]   ;;  %s4065_s3 = inlined_call_operand.vmem [shape: f32[1,32], index: 3, kind: input, shape index: {}]   ;;  %s4066_s4 = inlined_call_operand.vmem [shape: f32[5,32], index: 4, kind: input, shape index: {}]   ;;  %s4067_s5 = inlined_call_operand.vmem [shape: f32[2,1,32], index: 5, kind: input, shape index: {}]   ;;  %s4068_s6 = inlined_call_operand.vmem [shape: f32[2,1,32], index: 6, kind: input, shape index: {}]   ;;  %s4069_s7 = inlined_call_operand.vmem [shape: f32[2,32,96], index: 7, kind: input, shape index: {}]   ;;  %s4070_s8 = inlined_call_operand.vmem [shape: f32[2,1,96], index: 8, kind: input, shape index: {}]   ;;  %s4071_s9 = inlined_call_operand.vmem [shape: f32[2,32,32], index: 9, kind: input, shape index: {}]   ;;  %s4072_s10 = inlined_call_operand.vmem [shape: f32[2,1,32], index: 10, kind: input, shape index: {}]   ;;  %s4073_s11 = inlined_call_operand.vmem [shape: f32[2,1,32], index: 11, kind: input, shape index: {}]   ;;  %s4074_s12 = inlined_call_operand.vmem [shape: f32[2,1,32], index: 12, kind: input, shape index: {}]   ;;  %s4075_s13 = inlined_call_operand.vmem [shape: f32[2,32,64], index: 13, kind: input, shape index: {}]   ;;  %s4076_s14 = inlined_call_operand.vmem [shape: f32[2,1,64], index: 14, kind: input, shape index: {}]   ;;  %s4077_s15 = inlined_call_operand.vmem [shape: f32[2,64,32], index: 15, kind: input, shape index: {}]   ;;  %s4078_s16 = inlined_call_operand.vmem [shape: f32[2,1,32], index: 16, kind: input, shape index: {}]   ;;  %s4079_s17 = inlined_call_operand.vmem [shape: f32[1,32], index: 17, kind: input, shape index: {}]   ;;  %s4080_s18 = inlined_call_operand.vmem [shape: f32[1,32], index: 18, kind: input, shape index: {}]   ;;  %s4081_s19 = inlined_call_operand.vmem [shape: f32[32,128], index: 19, kind: input, shape index: {}]   ;;  %s4082_s20 = inlined_call_operand.vmem [shape: f32[1,128], index: 20, kind: input, shape index: {}]   ;;  %s4083_s21 = inlined_call_operand.hbm [shape: f32[2,128], index: 21, kind: output, shape index: {}]  }
   0x1   :  { %4093 = sst [smem:[#allocation5_spill]] %s4062_s0 }
   0x2   :  { %4094 = sst [smem:[#allocation6_spill]] %s4063_s1 }
   0x3   :  { %4095 = sst [smem:[#allocation7_spill]] %s4064_s2 }
   0x4   :  { %4096 = sst [smem:[#allocation8_spill]] %s4065_s3 }
   0x5   :  { %4097 = sst [smem:[#allocation9_spill]] %s4066_s4 }
   0x6   :  { %4098 = sst [smem:[#allocation10_spill]] %s4067_s5 }
   0x7   :  { %s4099_s26 = sld [smem:[#allocation7_spill]]  ;;  %s4100_s22 = sld [smem:[#allocation5_spill]] }
   0xd   :  { %v91_v0 = vld [vmem:[%s4099_s26 + $0x80] sm:$0xff]  ;;  %v92_v1 = vld [vmem:[%s4099_s26 + $0x88] sm:$0xff]  ;;  %v93_v11 = vld [vmem:[%s4099_s26 + $0x90] sm:$0xff] }
   0xe   :  { %v75_v2 = vld [vmem:[%s4099_s26] sm:$0xff]  ;;  %v2763_v3 = vpack.c.bf16 %v92_v1, %v91_v0  ;;  %v76_v4 = vld [vmem:[%s4099_s26 + $0x8] sm:$0xff]  ;;  %v94_v13 = vld [vmem:[%s4099_s26 + $0x98] sm:$0xff] }
   0xf   :  { %v123_v5 = vld [vmem:[%s4099_s26 + $0x180] sm:$0xff]  ;;  %v124_v6 = vld [vmem:[%s4099_s26 + $0x188] sm:$0xff]  ;;  %v2765_v7 = vpack.c.bf16 %v76_v4, %v75_v2  ;;  %v77_v14 = vld [vmem:[%s4099_s26 + $0x10] sm:$0xff]  ;;  %v2767_v16 = vpack.c.bf16 %v94_v13, %v93_v11 }
  0x10   :  { %v2795_v8 = vpack.c.bf16 %v124_v6, %v123_v5  ;;  %v107_v9 = vld [vmem:[%s4099_s26 + $0x100] sm:$0xff]  ;;  %v108_v10 = vld [vmem:[%s4099_s26 + $0x108] sm:$0xff]  ;;  %2764 = vmatprep.subr.bf16.mxu0 %v2763_v3  ;;  %v78_v15 = vld [vmem:[%s4099_s26 + $0x18] sm:$0xff] }
  0x11   :  { %v2797_v12 = vpack.c.bf16 %v108_v10, %v107_v9  ;;  %2766 = vmatpush3.bf16.msra.mxu0 %v2765_v7  ;;  %v2769_v17 = vpack.c.bf16 %v78_v15, %v77_v14  ;;  %v125_v18 = vld [vmem:[%s4099_s26 + $0x190] sm:$0xff]  ;;  %v126_v19 = vld [vmem:[%s4099_s26 + $0x198] sm:$0xff]  ;;  %v95_v23 = vld [vmem:[%s4099_s26 + $0xa0] sm:$0xff] }
  0x12   :  { %2796 = vmatprep.subr.bf16.mxu1 %v2795_v8  ;;  %v109_v20 = vld [vmem:[%s4099_s26 + $0x110] sm:$0xff]  ;;  %v2799_v21 = vpack.c.bf16 %v126_v19, %v125_v18  ;;  %v110_v22 = vld [vmem:[%s4099_s26 + $0x118] sm:$0xff]  ;;  %v96_v24 = vld [vmem:[%s4099_s26 + $0xa8] sm:$0xff]  ;;  %2768 = vmatprep.subr.bf16.mxu0 %v2767_v16 }
  0x13   :  { %2798 = vmatpush3.bf16.msra.mxu1 %v2797_v12  ;;  %v2801_v25 = vpack.c.bf16 %v110_v22, %v109_v20  ;;  %v2771_v26 = vpack.c.bf16 %v96_v24, %v95_v23  ;;  %v79_v27 = vld [vmem:[%s4099_s26 + $0x20] sm:$0xff]  ;;  %v80_v28 = vld [vmem:[%s4099_s26 + $0x28] sm:$0xff]  ;;  %v97_v35 = vld [vmem:[%s4099_s26 + $0xb0] sm:$0xff] }
  0x14   :  { %v127_v29 = vld [vmem:[%s4099_s26 + $0x1a0] sm:$0xff]  ;;  %2800 = vmatprep.subr.bf16.mxu1 %v2799_v21  ;;  %v128_v30 = vld [vmem:[%s4099_s26 + $0x1a8] sm:$0xff]  ;;  %v2773_v33 = vpack.c.bf16 %v80_v28, %v79_v27  ;;  %v98_v36 = vld [vmem:[%s4099_s26 + $0xb8] sm:$0xff] }
  0x15   :  { %v111_v31 = vld [vmem:[%s4099_s26 + $0x120] sm:$0xff]  ;;  %v112_v32 = vld [vmem:[%s4099_s26 + $0x128] sm:$0xff]  ;;  %2770 = vmatpush3.bf16.msra.mxu0 %v2769_v17  ;;  %v2803_v34 = vpack.c.bf16 %v128_v30, %v127_v29  ;;  %v81_v37 = vld [vmem:[%s4099_s26 + $0x30] sm:$0xff]  ;;  %v2775_v39 = vpack.c.bf16 %v98_v36, %v97_v35 }
  0x16   :  { %2772 = vmatprep.subr.bf16.mxu0 %v2771_v26  ;;  %v2805_v38 = vpack.c.bf16 %v112_v32, %v111_v31  ;;  %v82_v40 = vld [vmem:[%s4099_s26 + $0x38] sm:$0xff]  ;;  %v129_v41 = vld [vmem:[%s4099_s26 + $0x1b0] sm:$0xff]  ;;  %v99_v46 = vld [vmem:[%s4099_s26 + $0xc0] sm:$0xff] }
  0x17   :  { %2802 = vmatpush3.bf16.msra.mxu1 %v2801_v25  ;;  %v130_v42 = vld [vmem:[%s4099_s26 + $0x1b8] sm:$0xff]  ;;  %v113_v44 = vld [vmem:[%s4099_s26 + $0x130] sm:$0xff]  ;;  %v100_v47 = vld [vmem:[%s4099_s26 + $0xc8] sm:$0xff]  ;;  %v2777_v48 = vpack.c.bf16 %v82_v40, %v81_v37 }
  0x18   :  { %2804 = vmatprep.subr.bf16.mxu1 %v2803_v34  ;;  %v2807_v43 = vpack.c.bf16 %v130_v42, %v129_v41  ;;  %v114_v45 = vld [vmem:[%s4099_s26 + $0x138] sm:$0xff]  ;;  %v131_v49 = vld [vmem:[%s4099_s26 + $0x1c0] sm:$0xff]  ;;  %v132_v50 = vld [vmem:[%s4099_s26 + $0x1c8] sm:$0xff]  ;;  %v2779_v52 = vpack.c.bf16 %v100_v47, %v99_v46 }
  0x19   :  { %2774 = vmatpush3.bf16.msra.mxu0 %v2773_v33  ;;  %v2809_v51 = vpack.c.bf16 %v114_v45, %v113_v44  ;;  %v83_v53 = vld [vmem:[%s4099_s26 + $0x40] sm:$0xff]  ;;  %v84_v54 = vld [vmem:[%s4099_s26 + $0x48] sm:$0xff]  ;;  %v2811_v56 = vpack.c.bf16 %v132_v50, %v131_v49  ;;  %v101_v58 = vld [vmem:[%s4099_s26 + $0xd0] sm:$0xff] }
  0x1a   :  { %2776 = vmatprep.subr.bf16.mxu0 %v2775_v39  ;;  %v115_v55 = vld [vmem:[%s4099_s26 + $0x140] sm:$0xff]  ;;  %v116_v57 = vld [vmem:[%s4099_s26 + $0x148] sm:$0xff]  ;;  %v102_v59 = vld [vmem:[%s4099_s26 + $0xd8] sm:$0xff]  ;;  %v2781_v62 = vpack.c.bf16 %v84_v54, %v83_v53 }
  0x1b   :  { %2806 = vmatpush3.bf16.msra.mxu1 %v2805_v38  ;;  %v133_v60 = vld [vmem:[%s4099_s26 + $0x1d0] sm:$0xff]  ;;  %v134_v61 = vld [vmem:[%s4099_s26 + $0x1d8] sm:$0xff]  ;;  %v2813_v63 = vpack.c.bf16 %v116_v57, %v115_v55  ;;  %v2783_v0 = vpack.c.bf16 %v102_v59, %v101_v58  ;;  %v103_v6 = vld [vmem:[%s4099_s26 + $0xe0] sm:$0xff] }
  0x1c   :  { %2808 = vmatprep.subr.bf16.mxu1 %v2807_v43  ;;  %v85_v1 = vld [vmem:[%s4099_s26 + $0x50] sm:$0xff]  ;;  %v86_v2 = vld [vmem:[%s4099_s26 + $0x58] sm:$0xff]  ;;  %v2815_v4 = vpack.c.bf16 %v134_v61, %v133_v60  ;;  %v104_v7 = vld [vmem:[%s4099_s26 + $0xe8] sm:$0xff] }
  0x1d   :  { %2778 = vmatpush3.bf16.msra.mxu0 %v2777_v48  ;;  %v117_v3 = vld [vmem:[%s4099_s26 + $0x150] sm:$0xff]  ;;  %v118_v5 = vld [vmem:[%s4099_s26 + $0x158] sm:$0xff]  ;;  %v135_v8 = vld [vmem:[%s4099_s26 + $0x1e0] sm:$0xff]  ;;  %v2785_v10 = vpack.c.bf16 %v86_v2, %v85_v1  ;;  %v2787_v14 = vpack.c.bf16 %v104_v7, %v103_v6 }
  0x1e   :  { %2780 = vmatprep.subr.bf16.mxu0 %v2779_v52  ;;  %v136_v9 = vld [vmem:[%s4099_s26 + $0x1e8] sm:$0xff]  ;;  %v87_v11 = vld [vmem:[%s4099_s26 + $0x60] sm:$0xff]  ;;  %v2817_v13 = vpack.c.bf16 %v118_v5, %v117_v3  ;;  %v105_v19 = vld [vmem:[%s4099_s26 + $0xf0] sm:$0xff] }
  0x1f   :  { %2810 = vmatpush3.bf16.msra.mxu1 %v2809_v51  ;;  %v70_v12 = vld [vmem:[%s4100_s22 + $0x8] sm:$0xff]  ;;  %v119_v16 = vld [vmem:[%s4099_s26 + $0x160] sm:$0xff]  ;;  %v2819_v18 = vpack.c.bf16 %v136_v9, %v135_v8  ;;  %v106_v20 = vld [vmem:[%s4099_s26 + $0xf8] sm:$0xff] }
  0x20   :  { %2812 = vmatprep.subr.bf16.mxu1 %v2811_v56  ;;  %v88_v15 = vld [vmem:[%s4099_s26 + $0x68] sm:$0xff]  ;;  %242 = vmatprep.mubr.f32.mxu0 %v70_v12  ;;  %v72_v21 = vld [vmem:[%s4100_s22 + $0x18] sm:$0xff]  ;;  %v137_v22 = vld [vmem:[%s4099_s26 + $0x1f0] sm:$0xff]  ;;  %v2791_v26 = vpack.c.bf16 %v106_v20, %v105_v19 }
  0x21   :  { %2782 = vmatpush3.bf16.msra.mxu0 %v2781_v62  ;;  %v120_v17 = vld [vmem:[%s4099_s26 + $0x168] sm:$0xff]  ;;  %v138_v23 = vld [vmem:[%s4099_s26 + $0x1f8] sm:$0xff]  ;;  %312 = vmatprep.mubr.f32.mxu1 %v72_v21  ;;  %v2789_v24 = vpack.c.bf16 %v88_v15, %v87_v11  ;;  %v89_v27 = vld [vmem:[%s4099_s26 + $0x70] sm:$0xff] }
  0x22   :  { %2784 = vmatprep.subr.bf16.mxu0 %v2783_v0  ;;  %v2821_v25 = vpack.c.bf16 %v120_v17, %v119_v16  ;;  %v90_v28 = vld [vmem:[%s4099_s26 + $0x78] sm:$0xff]  ;;  %v121_v29 = vld [vmem:[%s4099_s26 + $0x170] sm:$0xff]  ;;  %v2823_v30 = vpack.c.bf16 %v138_v23, %v137_v22  ;;  %v155_v32 = vld [vmem:[%s4099_s26 + $0x280] sm:$0xff] }
  0x23   :  { %2814 = vmatpush3.bf16.msra.mxu1 %v2813_v63  ;;  %v122_v31 = vld [vmem:[%s4099_s26 + $0x178] sm:$0xff]  ;;  %v156_v33 = vld [vmem:[%s4099_s26 + $0x288] sm:$0xff]  ;;  %v2793_v34 = vpack.c.bf16 %v90_v28, %v89_v27  ;;  %v139_v37 = vld [vmem:[%s4099_s26 + $0x200] sm:$0xff] }
  0x24   :  { %2816 = vmatprep.subr.bf16.mxu1 %v2815_v4  ;;  %v2825_v35 = vpack.c.bf16 %v122_v31, %v121_v29  ;;  %v2827_v36 = vpack.c.bf16 %v156_v33, %v155_v32  ;;  %v140_v38 = vld [vmem:[%s4099_s26 + $0x208] sm:$0xff]  ;;  %v157_v39 = vld [vmem:[%s4099_s26 + $0x290] sm:$0xff]  ;;  %v158_v40 = vld [vmem:[%s4099_s26 + $0x298] sm:$0xff] }
  0x25   :  { %2786 = vmatpush3.bf16.msra.mxu0 %v2785_v10  ;;  %v69_v41 = vld [vmem:[%s4100_s22] sm:$0xff]  ;;  %v2829_v42 = vpack.c.bf16 %v140_v38, %v139_v37  ;;  %v71_v43 = vld [vmem:[%s4100_s22 + $0x10] sm:$0xff]  ;;  %v2831_v44 = vpack.c.bf16 %v158_v40, %v157_v39  ;;  %v142_v46 = vld [vmem:[%s4099_s26 + $0x218] sm:$0xff] }
  0x26   :  { %2788 = vmatprep.subr.bf16.mxu0 %v2787_v14  ;;  %v141_v45 = vld [vmem:[%s4099_s26 + $0x210] sm:$0xff]  ;;  %v159_v47 = vld [vmem:[%s4099_s26 + $0x2a0] sm:$0xff]  ;;  %v160_v48 = vld [vmem:[%s4099_s26 + $0x2a8] sm:$0xff] }
  0x27   :  { %2818 = vmatpush3.bf16.msra.mxu1 %v2817_v13  ;;  %v74_v49 = vld [vmem:[%s4100_s22 + $0x28] sm:$0xff] }
  0x28   :  { %2820 = vmatprep.subr.bf16.mxu1 %v2819_v18 }
  0x29   :  { %2790 = vmatpush3.bf16.msra.mxu0 %v2789_v24 }
  0x2a   :  { %2792 = vmatprep.subr.bf16.mxu0 %v2791_v26 }
  0x2b   :  { %2822 = vmatpush3.bf16.msra.mxu1 %v2821_v25 }
  0x2c   :  { %2824 = vmatprep.subr.bf16.mxu1 %v2823_v30 }
  0x2d   :  { %2794 = vmatpush3.bf16.msra.mxu0 %v2793_v34 }
  0x2e   :  { %2828 = vmatprep.subr.bf16.mxu0 %v2827_v36 }
  0x2f   :  { %2826 = vmatpush3.bf16.msra.mxu1 %v2825_v35 }
  0x30   :  { %26 = vsyncpa [#allocation3], 0  ;;  %243 = vmatmul.mubr.f32.vlgmr.msra.gmra.mrb[0].mxu0 %v69_v41  ;;  %v2833_v50 = vpack.c.bf16 %v142_v46, %v141_v45  ;;  %v2835_v51 = vpack.c.bf16 %v160_v48, %v159_v47  ;;  %v143_v52 = vld [vmem:[%s4099_s26 + $0x220] sm:$0xff]  ;;  %v144_v53 = vld [vmem:[%s4099_s26 + $0x228] sm:$0xff]  ;;  %s4101_s28 = sld [smem:[#allocation8_spill]]  ;;  %s4102_s0 = sld [smem:[#allocation9_spill]] }
  0x31   :  { %2830 = vmatpush3.bf16.msra.mxu0 %v2829_v42  ;;  %382 = vmatprep.mubr.f32.mxu0 %v74_v49  ;;  %v161_v54 = vld [vmem:[%s4099_s26 + $0x2b0] sm:$0xff]  ;;  %v162_v55 = vld [vmem:[%s4099_s26 + $0x2b8] sm:$0xff]  ;;  %v2837_v56 = vpack.c.bf16 %v144_v53, %v143_v52  ;;  %v163_v60 = vld [vmem:[%s4099_s26 + $0x2c0] sm:$0xff]  ;;  %vm404_vm0 = vcmask 1040384   ;;  %vm406_vm1 = vcmask 1044480   ;;  %vm408_vm2 = vcmask 1045504  }
  0x32   :  { %313 = vmatmul.mubr.f32.vlgmr.msra.gmra.mrb[0].mxu1 %v71_v43  ;;  %2832 = vmatprep.subr.bf16.mxu0 %v2831_v44  ;;  %v2839_v57 = vpack.c.bf16 %v162_v55, %v161_v54  ;;  %v145_v58 = vld [vmem:[%s4099_s26 + $0x230] sm:$0xff]  ;;  %v146_v59 = vld [vmem:[%s4099_s26 + $0x238] sm:$0xff]  ;;  %v164_v61 = vld [vmem:[%s4099_s26 + $0x2c8] sm:$0xff]  ;;  %vm417_vm3 = vcmask 261120   ;;  %vm421_vm4 = vcmask 254976   ;;  %s3115_s30 = smov 112  }
  0x33   :  { %v2841_v62 = vpack.c.bf16 %v146_v59, %v145_v58  ;;  %v2843_v63 = vpack.c.bf16 %v164_v61, %v163_v60  ;;  %v147_v0 = vld [vmem:[%s4099_s26 + $0x240] sm:$0xff]  ;;  %v148_v1 = vld [vmem:[%s4099_s26 + $0x248] sm:$0xff]  ;;  %v165_v2 = vld [vmem:[%s4099_s26 + $0x2d0] sm:$0xff]  ;;  %s3116_s5 = smov 120   ;;  %vm556_vm5 = vcmask 1041408   ;;  %s3117_s23 = smov 104  }
  0x34   :  { %v166_v3 = vld [vmem:[%s4099_s26 + $0x2d8] sm:$0xff]  ;;  %v2845_v4 = vpack.c.bf16 %v148_v1, %v147_v0  ;;  %v149_v6 = vld [vmem:[%s4099_s26 + $0x250] sm:$0xff]  ;;  %v167_v8 = vld [vmem:[%s4099_s26 + $0x2e0] sm:$0xff]  ;;  %vm566_vm6 = vcmask 1043456   ;;  %s3119_s1 = smov 96   ;;  %vm3120_vm7 = vmmov 0  }
  0x35   :  { %2834 = vmatpush3.bf16.msra.mxu0 %v2833_v50  ;;  %v2847_v5 = vpack.c.bf16 %v166_v3, %v165_v2  ;;  %v150_v7 = vld [vmem:[%s4099_s26 + $0x258] sm:$0xff]  ;;  %v168_v9 = vld [vmem:[%s4099_s26 + $0x2e8] sm:$0xff]  ;;  %v151_v12 = vld [vmem:[%s4099_s26 + $0x260] sm:$0xff]  ;;  %vm600_vm8 = vcmask 64512   ;;  %s4106_s25 = sld [smem:[#allocation6_spill]]  ;;  %vm711_vm10 = vcmask 326656  }
  0x36   :  { %2836 = vmatprep.subr.bf16.mxu0 %v2835_v51  ;;  %v2849_v10 = vpack.c.bf16 %v150_v7, %v149_v6  ;;  %v2851_v11 = vpack.c.bf16 %v168_v9, %v167_v8  ;;  %v152_v13 = vld [vmem:[%s4099_s26 + $0x268] sm:$0xff]  ;;  %v169_v14 = vld [vmem:[%s4099_s26 + $0x2f0] sm:$0xff]  ;;  %v170_v15 = vld [vmem:[%s4099_s26 + $0x2f8] sm:$0xff]  ;;  %s3122_s2 = smov 64   ;;  %s3123_s24 = smov 8   ;;  %vm920_vm11 = vcmask 130048  }
  0x37   :  { %v2853_v16 = vpack.c.bf16 %v152_v13, %v151_v12  ;;  %v2855_v17 = vpack.c.bf16 %v170_v15, %v169_v14  ;;  %v153_v18 = vld [vmem:[%s4099_s26 + $0x270] sm:$0xff]  ;;  %v154_v19 = vld [vmem:[%s4099_s26 + $0x278] sm:$0xff]  ;;  %v73_v21 = vld [vmem:[%s4100_s22 + $0x20] sm:$0xff]  ;;  %s4103_s26 = sld [smem:[#allocation10_spill]]  ;;  %s4089_s27 = smov 24   ;;  %vm923_vm12 = vcmask 195584  }
  0x38   :  { %v2857_v20 = vpack.c.bf16 %v154_v19, %v153_v18  ;;  %v2247_v23 = vld [vmem:[%s4101_s28] ss:$0 sm:$0xff]  ;;  %v389_v31 = vld [vmem:[%s4102_s0 + $0x1] sm:$0xf]  ;;  %v463_v59 = vld [vmem:[%s4069_s7 + $0x8] sm:$0xff]  ;;  %vm1181_vm13 = vcmask 523264  }
  0x39   :  { %2838 = vmatpush3.bf16.msra.mxu0 %v2837_v56  ;;  %v392_v35 = vrot.slane %v389_v31, 4  ;;  %v388_v37 = vld [vmem:[%s4102_s0] sm:$0x1]  ;;  %v464_v61 = vld [vmem:[%s4069_s7 + $0x10] sm:$0xff]  ;;  %vm3622_vm9 = vmpackc.low %vm600_vm8, %vm600_vm8  ;;  %s4108_s4 = smov 24  }
  0x3a   :  { %2840 = vmatprep.subr.bf16.mxu0 %v2839_v57  ;;  %v399_v40 = vrot.slane %v388_v37, 3  ;;  %v462_v58 = vld [vmem:[%s4069_s7] sm:$0xff] }
  0x3b   :  { %v2859_v60 = vpack.c.bf16 %v463_v59, %v462_v58  ;;  %v2249_v9 = vld [vmem:[%s4068_s6] ss:$0 sm:$0xff]  ;;  %v3656_v59 = vld [vmem:[%s4106_s25 + $0x8] sm:$0xff] }
  0x3d   :  { %2842 = vmatpush3.bf16.msra.mxu0 %v2841_v62  ;;  %2860 = vmatprep.subr.bf16.mxu1 %v2859_v60  ;;  %v465_v62 = vld [vmem:[%s4069_s7 + $0x18] sm:$0xff]  ;;  %v2248_v7 = vld [vmem:[%s4103_s26] ss:$0 sm:$0xff] }
  0x3e   :  { %2844 = vmatprep.subr.bf16.mxu0 %v2843_v63  ;;  %2862 = vmatpush3.bf16.msra.mxu1 %v2859_v60  ;;  %v2863_v63 = vpack.c.bf16 %v465_v62, %v464_v61 }
  0x40   :  { %2864 = vmatprep.subr.bf16.mxu1 %v2863_v63 }
  0x41   :  { %2846 = vmatpush3.bf16.msra.mxu0 %v2845_v4 }
  0x42   :  { %2848 = vmatprep.subr.bf16.mxu0 %v2847_v5  ;;  %2866 = vmatpush3.bf16.msra.mxu1 %v2863_v63 }
  0x45   :  { %2850 = vmatpush3.bf16.msra.mxu0 %v2849_v10 }
  0x46   :  { %2852 = vmatprep.subr.bf16.mxu0 %v2851_v11 }
  0x49   :  { %2854 = vmatpush3.bf16.msra.mxu0 %v2853_v16  ;;  %v2250_v16 = vld [vmem:[%s4070_s8] ss:$0 sm:$0xff] }
  0x4a   :  { %2856 = vmatprep.subr.bf16.mxu0 %v2855_v17 }
  0x4d   :  { %2858 = vmatpush3.bf16.msra.mxu0 %v2857_v20 }
  0x50   :  { %383 = vmatmul.mubr.f32.vlgmr.msra.gmra.mrb[2].mxu0 %v73_v21 }
 0x103   :  { %v2374_v22 = vpop.f32.mrb[0].mxu0 }
 0x104   :  { %v2375_v24 = vpop.f32.mrb[1].mxu0 }
 0x105   :  { %v2409_v25 = vpop.f32.mrb[0].mxu1  ;;  %v2376_v26 = vadd.f32 %v2375_v24, %v2374_v22 }
 0x106   :  { %v2410_v27 = vpop.f32.mrb[1].mxu1 }
 0x107   :  { %v2411_v28 = vadd.f32 %v2410_v27, %v2409_v25  ;;  %v245_v29 = vadd.f32 %v2376_v26, %v2247_v23 }
 0x109   :  { %v315_v30 = vadd.f32 %v2411_v28, %v245_v29 }
 0x123   :  { %v2444_v32 = vpop.f32.mrb[2].mxu0 }
 0x124   :  { %v2445_v33 = vpop.f32.mrb[3].mxu0 }
 0x125   :  { %v2446_v34 = vadd.f32 %v2445_v33, %v2444_v32 }
 0x127   :  { %v385_v36 = vadd.f32 %v2446_v34, %v315_v30  ;;  %v3118_v30 = vmov 0.0|0.0  }
 0x128   :  { %2867 = vmatprep.subr.bf16.mxu1 %v3118_v30  ;;  %2875 = vmatprep.subr.bf16.mxu0 %v3118_v30 }
 0x129   :  { %v390_v38 = vadd.f32 %v389_v31, %v385_v36  ;;  %v394_v39 = vadd.f32 %v392_v35, %v385_v36 }
 0x12b   :  { %v396_v41 = vrot.slane %v390_v38, 7  ;;  %v3552_v42 = vrot.slane %v394_v39, 6 }
 0x12d   :  { %v405_v43 = vsel %vm404_vm0, %v388_v37, %v396_v41  ;;  %v422_v47 = vsel %vm421_vm4, %v3552_v42, 0.0 }
 0x12e   :  { %v407_v44 = vsel %vm406_vm1, %v405_v43, %v399_v40  ;;  %v3121_v43 = vmov 0.0  }
 0x12f   :  { %v3557_v45 = vsel %vm408_vm2, %v407_v44, %v3552_v42  ;;  %2594 = vmatprep.mubr.msk.f32.mxu0 %vm3120_vm7, %v3121_v43 }
 0x130   :  { %v418_v46 = vsel %vm417_vm3, %v3557_v45, 0.0 }
 0x131   :  { %419 = vadd.xlane.f32.xlu0 %v418_v46 }
 0x135   :  { %423 = vadd.xlane.f32.xlu0 %v422_v47 }
 0x1be   :  { %v420_v48 = vpop.xlane.xlu0 %419 }
 0x1bf   :  { %v426_v49 = vmul.f32 0.03125, %v420_v48 }
 0x1c1   :  { %v428_v50 = vsub.f32 %v3557_v45, %v426_v49 }
 0x1c2   :  { %v424_v51 = vpop.xlane.xlu0 %423 }
 0x1c3   :  { %v427_v52 = vmul.f32 0.03125, %v424_v51  ;;  %v430_v53 = vmul.f32 %v428_v50, %v428_v50 }
 0x1c5   :  { %v429_v54 = vsub.f32 %v3552_v42, %v427_v52  ;;  %v432_v55 = vsel %vm417_vm3, %v430_v53, 0.0 }
 0x1c6   :  { %433 = vadd.xlane.f32.xlu1 %v432_v55  ;;  %v3650_v55 = vld [vmem:[%s4106_s25] sm:$0xff] }
 0x1c7   :  { %v431_v56 = vmul.f32 %v429_v54, %v429_v54 }
 0x1c9   :  { %v435_v57 = vsel %vm421_vm4, %v431_v56, 0.0 }
 0x1ca   :  { %436 = vadd.xlane.f32.xlu1 %v435_v57 }
 0x253   :  { %v434_v0 = vpop.xlane.xlu1 %433 }
 0x254   :  { %v438_v1 = vmul.f32 0.03125, %v434_v0  ;;  %v3663_v0 = vld [vmem:[%s4106_s25 + $0x10] sm:$0xff] }
 0x256   :  { %v440_v2 = vadd.f32 1e-06, %v438_v1 }
 0x257   :  { %v437_v3 = vpop.xlane.xlu1 %436 }
 0x258   :  { %3025 = vrsqrt.f32 %v440_v2  ;;  %v439_v4 = vmul.f32 0.03125, %v437_v3 }
 0x25a   :  { %v441_v5 = vadd.f32 1e-06, %v439_v4 }
 0x25c   :  { %3027 = vrsqrt.f32 %v441_v5  ;;  %v3670_v5 = vld [vmem:[%s4106_s25 + $0x18] sm:$0xff] }
 0x262   :  { %v3026_v6 = vpop.eup %3025 }
 0x263   :  { %v444_v8 = vmul.f32 %v3026_v6, %v428_v50 }
 0x265   :  { %v452_v10 = vmul.f32 %v2248_v7, %v444_v8 }
 0x266   :  { %v3028_v11 = vpop.eup %3027 }
 0x267   :  { %v445_v12 = vmul.f32 %v3028_v11, %v429_v54  ;;  %v460_v13 = vadd.f32 %v2249_v9, %v452_v10  ;;  %v3677_v10 = vld [vmem:[%s4106_s25 + $0x20] sm:$0xff]  ;;  %s4091_s25 = smov 16  }
 0x269   :  { %v453_v14 = vmul.f32 %v2248_v7, %v445_v12  ;;  %2556 = vmatprep.mubr.msk.f32.mxu1 %vm417_vm3, %v460_v13 }
 0x26b   :  { %v461_v15 = vadd.f32 %v2249_v9, %v453_v14 }
 0x26d   :  { %2557 = vmatmul.mubr.msk.f32.vlgmr.msra.gmra.mrb[2].mxu1 %vm417_vm3, %v461_v15 }
 0x26e   :  { %2569 = vmatprep.mubr.msk.f32.mxu1 %vm3120_vm7, %v3121_v43 }
 0x340   :  { %v2558_v17 = vpop.f32.mrb[2].mxu1 }
 0x341   :  { %v551_v18 = vadd.f32 %v2558_v17, %v2250_v16  ;;  %v545_v19 = vpop.f32.mrb[3].mxu1 }
 0x342   :  { %v546_v20 = vadd.f32 %v2250_v16, %v545_v19 }
 0x343   :  { %v558_v23 = vrot.slane %v551_v18, 6  ;;  %v568_v26 = vrot.slane %v551_v18, 4  ;;  %v577_v28 = vrot.slane %v551_v18, 2 }
 0x344   :  { %v567_v21 = vrot.slane %v546_v20, 4  ;;  %v557_v22 = vrot.slane %v546_v20, 6  ;;  %v576_v24 = vrot.slane %v546_v20, 2 }
 0x346   :  { %570 = vrot.lane.b32.xlu1 %v567_v21, %s3115_s30  ;;  %560 = vrot.lane.b32.xlu0 %v557_v22, %s3116_s5  ;;  %v559_v25 = vsel %vm556_vm5, %v557_v22, %v558_v23  ;;  %v569_v27 = vsel %vm566_vm6, %v567_v21, %v568_v26  ;;  %v578_v29 = vsel %vm408_vm2, %v576_v24, %v577_v28 }
 0x34a   :  { %579 = vrot.lane.b32.xlu0 %v576_v24, %s3117_s23  ;;  %562 = vrot.lane.b32.xlu1 %v559_v25, %s3116_s5 }
 0x34e   :  { %572 = vrot.lane.b32.xlu1 %v569_v27, %s3115_s30 }
 0x352   :  { %581 = vrot.lane.b32.xlu1 %v578_v29, %s3117_s23 }
 0x3b8   :  { %v571_v31 = vpop.permute.xlu1 %570  ;;  %v561_v32 = vpop.permute.xlu0 %560 }
 0x3b9   :  { %v584_v33 = vsel %vm556_vm5, %v551_v18, %v561_v32 }
 0x3ba   :  { %v3602_v34 = vpack.i.bf16 %v584_v33, %v546_v20 }
 0x3bc   :  { %2986 = vrot.lane.b32.xlu0 %v3602_v34, %s3119_s1  ;;  %v563_v35 = vpop.permute.xlu1 %562  ;;  %v580_v36 = vpop.permute.xlu0 %579 }
 0x3bd   :  { %v585_v38 = vsel %vm566_vm6, %v563_v35, %v571_v31 }
 0x3c0   :  { %v573_v37 = vpop.permute.xlu1 %572 }
 0x3c1   :  { %v586_v39 = vsel %vm408_vm2, %v573_v37, %v580_v36 }
 0x3c2   :  { %v3608_v40 = vpack.i.bf16 %v586_v39, %v585_v38 }
 0x3c4   :  { %2991 = vrot.lane.b32.xlu1 %v3608_v40, %s3119_s1  ;;  %v3612_v41 = vpop.permute.xlu1 %581 }
 0x3c5   :  { %598 = vrot.lane.b32.xlu0 %v3612_v41, %s3119_s1 }
 0x42e   :  { %v2987_v44 = vpop.permute.xlu0 %2986 }
 0x42f   :  { %v2989_v46 = vunpack.i.h.bf16 %v2987_v44  ;;  %v2988_v47 = vunpack.i.l.bf16 %v2987_v44 }
 0x431   :  { %v2868_v49 = vpack.c.bf16 %v2989_v46, %v2988_v47 }
 0x433   :  { %2870 = vmatpush3.bf16.xpose.msk.msra.mxu1 %vm3622_vm9, %v2868_v49 }
 0x434   :  { %2871 = vmatprep.subr.bf16.mxu1 %v3118_v30 }
 0x436   :  { %v2992_v50 = vpop.permute.xlu1 %2991 }
 0x437   :  { %v2994_v51 = vunpack.i.h.bf16 %v2992_v50  ;;  %v2993_v52 = vunpack.i.l.bf16 %v2992_v50  ;;  %v599_v54 = vpop.permute.xlu0 %598 }
 0x439   :  { %v2872_v53 = vpack.c.bf16 %v2994_v51, %v2993_v52 }
 0x43b   :  { %2874 = vmatpush3.bf16.xpose.msk.msra.mxu1 %vm3622_vm9, %v2872_v53 }
 0x43c   :  { %2567 = vmatprep.subr.mxu1 %v3121_v43 }
 0x443   :  { %2568 = vmatpush3.xpose.msk.msra.mxu1 %vm600_vm8, %v599_v54 }
 0x446   :  { %2570 = vmatmul.mubr.msk.f32.vlgmr.msra.gmra.mrb[4].mxu1 %vm600_vm8, %v546_v20 }
 0x447   :  { %2572 = vmatprep.mubr.msk.f32.mxu1 %vm3120_vm7, %v3121_v43 }
 0x44a   :  { %2573 = vmatmul.mubr.msk.f32.gmra.mrb[6].mxu1 %vm600_vm8, %v584_v33 }
 0x44b   :  { %2575 = vmatprep.mubr.msk.f32.mxu1 %vm3120_vm7, %v3121_v43 }
 0x44e   :  { %2576 = vmatmul.mubr.msk.f32.gmra.mrb[8].mxu1 %vm600_vm8, %v585_v38 }
 0x44f   :  { %2578 = vmatprep.mubr.msk.f32.mxu1 %vm3120_vm7, %v3121_v43 }
 0x452   :  { %2579 = vmatmul.mubr.msk.f32.gmra.mrb[10].mxu1 %vm600_vm8, %v586_v39 }
 0x453   :  { %2581 = vmatprep.mubr.msk.f32.mxu1 %vm3120_vm7, %v3121_v43 }
 0x456   :  { %2582 = vmatmul.mubr.msk.f32.gmra.mrb[12].mxu1 %vm600_vm8, %v3612_v41 }
 0x519   :  { %v687_v56 = vpop.f32.mrb[4].mxu1 }
 0x51a   :  { %v688_v57 = vadd.f32 %v687_v56, %v3650_v55  ;;  %v2571_v58 = vpop.f32.mrb[5].mxu1 }
 0x51c   :  { %v712_v60 = vsel %vm711_vm10, %v688_v57, -inf }
 0x51d   :  { %713 = vmax.xlane.f32.xlu1 %v712_v60  ;;  %v692_v61 = vpop.f32.mrb[6].mxu1 }
 0x51e   :  { %v693_v62 = vadd.f32 %v692_v61, %v3656_v59  ;;  %v2574_v63 = vpop.f32.mrb[7].mxu1 }
 0x520   :  { %v715_v1 = vsel %vm711_vm10, %v693_v62, -inf }
 0x521   :  { %716 = vmax.xlane.f32.xlu0 %v715_v1  ;;  %v697_v2 = vpop.f32.mrb[8].mxu1 }
 0x522   :  { %v698_v3 = vadd.f32 %v697_v2, %v3663_v0  ;;  %v2577_v4 = vpop.f32.mrb[9].mxu1 }
 0x524   :  { %v718_v6 = vsel %vm711_vm10, %v698_v3, -inf }
 0x525   :  { %719 = vmax.xlane.f32.xlu0 %v718_v6  ;;  %v702_v7 = vpop.f32.mrb[10].mxu1 }
 0x526   :  { %v703_v8 = vadd.f32 %v702_v7, %v3670_v5  ;;  %v2580_v9 = vpop.f32.mrb[11].mxu1 }
 0x528   :  { %v721_v11 = vsel %vm711_vm10, %v703_v8, -inf }
 0x529   :  { %722 = vmax.xlane.f32.xlu0 %v721_v11  ;;  %v707_v12 = vpop.f32.mrb[12].mxu1  ;;  %v926_v11 = vld [vmem:[%s4071_s9] sm:$0xff] }
 0x52a   :  { %v708_v13 = vadd.f32 %v707_v12, %v3677_v10  ;;  %v2583_v14 = vpop.f32.mrb[13].mxu1  ;;  %v927_v12 = vld [vmem:[%s4071_s9 + $0x8] sm:$0xff] }
 0x52b   :  { %v928_v14 = vld [vmem:[%s4071_s9 + $0x10] sm:$0xff] }
 0x52c   :  { %v724_v15 = vsel %vm711_vm10, %v708_v13, -inf }
 0x52d   :  { %725 = vmax.xlane.f32.xlu1 %v724_v15  ;;  %v929_v15 = vld [vmem:[%s4071_s9 + $0x18] sm:$0xff] }
 0x53e   :  { %2996 = vrot.lane.b32.xlu1 %v3602_v34, %s3122_s2 }
 0x5aa   :  { %v714_v16 = vpop.xlane.xlu1 %713 }
 0x5ab   :  { %v727_v17 = vsub.f32 %v688_v57, %v714_v16  ;;  %v2885_v16 = vpack.c.bf16 %v929_v15, %v928_v14  ;;  %v1066_v14 = vld [vmem:[%s4075_s13 + $0x10] sm:$0xff]  ;;  %v1067_v15 = vld [vmem:[%s4075_s13 + $0x18] sm:$0xff] }
 0x5ad   :  { %v732_v18 = vmul.f32 1.442695, %v727_v17 }
 0x5ae   :  { %v717_v19 = vpop.xlane.xlu0 %716 }
 0x5af   :  { %3029 = vpow2.f32 %v732_v18  ;;  %v728_v20 = vsub.f32 %v693_v62, %v717_v19 }
 0x5b1   :  { %v734_v21 = vmul.f32 1.442695, %v728_v20 }
 0x5b2   :  { %v720_v22 = vpop.xlane.xlu0 %719 }
 0x5b3   :  { %3031 = vpow2.f32 %v734_v21  ;;  %v729_v23 = vsub.f32 %v698_v3, %v720_v22 }
 0x5b5   :  { %v736_v24 = vmul.f32 1.442695, %v729_v23 }
 0x5b6   :  { %v723_v25 = vpop.xlane.xlu0 %722 }
 0x5b7   :  { %3033 = vpow2.f32 %v736_v24  ;;  %v730_v26 = vsub.f32 %v703_v8, %v723_v25 }
 0x5b9   :  { %v3030_v27 = vpop.eup %3029  ;;  %v738_v28 = vmul.f32 1.442695, %v730_v26 }
 0x5ba   :  { %v726_v29 = vpop.xlane.xlu1 %725  ;;  %v742_v31 = vsel %vm711_vm10, %v3030_v27, 0.0 }
 0x5bb   :  { %3035 = vpow2.f32 %v738_v28  ;;  %v731_v32 = vsub.f32 %v708_v13, %v726_v29  ;;  %743 = vadd.xlane.f32.xlu0 %v742_v31  ;;  %v2881_v13 = vpack.c.bf16 %v927_v12, %v926_v11  ;;  %v1064_v11 = vld [vmem:[%s4075_s13] sm:$0xff]  ;;  %v1065_v12 = vld [vmem:[%s4075_s13 + $0x8] sm:$0xff] }
 0x5bd   :  { %v3032_v33 = vpop.eup %3031  ;;  %v740_v34 = vmul.f32 1.442695, %v731_v32  ;;  %2882 = vmatprep.subr.bf16.mxu1 %v2881_v13 }
 0x5be   :  { %v2997_v35 = vpop.permute.xlu1 %2996  ;;  %v745_v36 = vsel %vm711_vm10, %v3032_v33, 0.0  ;;  %2884 = vmatpush3.bf16.msra.mxu1 %v2881_v13  ;;  %v2889_v13 = vpack.c.bf16 %v1065_v12, %v1064_v11 }
 0x5bf   :  { %3037 = vpow2.f32 %v740_v34  ;;  %v2999_v37 = vunpack.i.h.bf16 %v2997_v35  ;;  %v2998_v38 = vunpack.i.l.bf16 %v2997_v35  ;;  %746 = vadd.xlane.f32.xlu1 %v745_v36  ;;  %2886 = vmatprep.subr.bf16.mxu1 %v2885_v16 }
 0x5c1   :  { %v3034_v39 = vpop.eup %3033  ;;  %v2876_v44 = vpack.c.bf16 %v2999_v37, %v2998_v38 }
 0x5c2   :  { %v748_v46 = vsel %vm711_vm10, %v3034_v39, 0.0  ;;  %2888 = vmatpush3.bf16.msra.mxu1 %v2885_v16  ;;  %v2893_v16 = vpack.c.bf16 %v1067_v15, %v1066_v14 }
 0x5c3   :  { %749 = vadd.xlane.f32.xlu0 %v748_v46  ;;  %2877 = vmatpush3.bf16.msra.mxu0 %v2876_v44 }
 0x5c4   :  { %2878 = vmatprep.subr.bf16.mxu0 %v3118_v30  ;;  %2890 = vmatprep.subr.bf16.mxu1 %v2889_v13 }
 0x5c5   :  { %v3036_v47 = vpop.eup %3035 }
 0x5c6   :  { %v751_v49 = vsel %vm711_vm10, %v3036_v47, 0.0 }
 0x5c7   :  { %752 = vadd.xlane.f32.xlu1 %v751_v49 }
 0x5c9   :  { %v3038_v50 = vpop.eup %3037 }
 0x5ca   :  { %v754_v51 = vsel %vm711_vm10, %v3038_v50, 0.0 }
 0x5cb   :  { %755 = vadd.xlane.f32.xlu0 %v754_v51 }
 0x5d8   :  { %775 = vrot.lane.b32.xlu1 %v3612_v41, %s3122_s2 }
 0x5e1   :  { %3001 = vrot.lane.b32.xlu0 %v3608_v40, %s3122_s2 }
 0x648   :  { %v744_v52 = vpop.xlane.xlu0 %743 }
 0x649   :  { %3039 = vrcp.f32 %v744_v52 }
 0x64c   :  { %v747_v54 = vpop.xlane.xlu1 %746 }
 0x64d   :  { %3041 = vrcp.f32 %v747_v54 }
 0x650   :  { %v750_v53 = vpop.xlane.xlu0 %749 }
 0x651   :  { %3043 = vrcp.f32 %v750_v53 }
 0x653   :  { %v3040_v63 = vpop.eup %3039 }
 0x654   :  { %v753_v61 = vpop.xlane.xlu1 %752  ;;  %v762_v41 = vmul.f32 %v3040_v63, %v3030_v27 }
 0x655   :  { %3045 = vrcp.f32 %v753_v61 }
 0x657   :  { %v3042_v40 = vpop.eup %3041 }
 0x658   :  { %v756_v56 = vpop.xlane.xlu0 %755  ;;  %v776_v1 = vpop.permute.xlu1 %775  ;;  %v763_v2 = vmul.f32 %v3042_v40, %v3032_v33 }
 0x659   :  { %3047 = vrcp.f32 %v756_v56  ;;  %v2268_v56 = vld [vmem:[%s4072_s10] ss:$0 sm:$0xff] }
 0x65b   :  { %v3044_v3 = vpop.eup %3043 }
 0x65c   :  { %v3002_v57 = vpop.permute.xlu0 %3001  ;;  %v764_v4 = vmul.f32 %v3044_v3, %v3034_v39 }
 0x65d   :  { %v3004_v58 = vunpack.i.h.bf16 %v3002_v57  ;;  %v3003_v60 = vunpack.i.l.bf16 %v3002_v57 }
 0x65f   :  { %v2879_v62 = vpack.c.bf16 %v3004_v58, %v3003_v60  ;;  %v3046_v6 = vpop.eup %3045 }
 0x660   :  { %v765_v7 = vmul.f32 %v3046_v6, %v3036_v47 }
 0x661   :  { %2880 = vmatpush3.bf16.msra.mxu0 %v2879_v62 }
 0x662   :  { %2592 = vmatprep.subr.mxu0 %v3121_v43 }
 0x663   :  { %v3048_v8 = vpop.eup %3047 }
 0x664   :  { %v766_v9 = vmul.f32 %v3048_v8, %v3038_v50 }
 0x665   :  { %2593 = vmatpush3.msra.mxu0 %v776_v1 }
 0x666   :  { %2595 = vmatmul.mubr.msk.f32.vlgmr.msra.gmra.mrb[4].mxu0 %vm711_vm10, %v762_v41 }
 0x667   :  { %2597 = vmatprep.mubr.msk.f32.mxu0 %vm3120_vm7, %v3121_v43 }
 0x66a   :  { %2598 = vmatmul.mubr.msk.f32.gmra.mrb[6].mxu0 %vm711_vm10, %v763_v2 }
 0x66b   :  { %2600 = vmatprep.mubr.msk.f32.mxu0 %vm3120_vm7, %v3121_v43 }
 0x66e   :  { %2601 = vmatmul.mubr.msk.f32.gmra.mrb[8].mxu0 %vm711_vm10, %v764_v4 }
 0x66f   :  { %2603 = vmatprep.mubr.msk.f32.mxu0 %vm3120_vm7, %v3121_v43 }
 0x672   :  { %2604 = vmatmul.mubr.msk.f32.gmra.mrb[10].mxu0 %vm711_vm10, %v765_v7 }
 0x673   :  { %2606 = vmatprep.mubr.msk.f32.mxu0 %vm3120_vm7, %v3121_v43 }
 0x676   :  { %2607 = vmatmul.mubr.msk.f32.gmra.mrb[12].mxu0 %vm711_vm10, %v766_v9 }
 0x739   :  { %v863_v17 = vpop.f32.mrb[4].mxu0 }
 0x73a   :  { %v2596_v18 = vpop.f32.mrb[5].mxu0 }
 0x73d   :  { %v868_v19 = vpop.f32.mrb[6].mxu0 }
 0x73e   :  { %v2599_v20 = vpop.f32.mrb[7].mxu0  ;;  %v889_v22 = vrot.slane %v868_v19, 2 }
 0x741   :  { %v873_v21 = vpop.f32.mrb[8].mxu0 }
 0x742   :  { %v890_v23 = vrot.slane %v873_v21, 2  ;;  %v2602_v24 = vpop.f32.mrb[9].mxu0  ;;  %v899_v27 = vrot.slane %v873_v21, 4 }
 0x743   :  { %v2271_v24 = vld [vmem:[%s4073_s11] ss:$0 sm:$0xff] }
 0x744   :  { %894 = vrot.lane.b32.xlu1 %v890_v23, %s3123_s24  ;;  %v891_v25 = vsel %vm408_vm2, %v889_v22, %v890_v23 }
 0x745   :  { %v878_v26 = vpop.f32.mrb[10].mxu0 }
 0x746   :  { %v900_v28 = vrot.slane %v878_v26, 4  ;;  %v2605_v29 = vpop.f32.mrb[11].mxu0  ;;  %v909_v33 = vrot.slane %v878_v26, 6  ;;  %v2272_v26 = vld [vmem:[%s4074_s12] ss:$0 sm:$0xff] }
 0x748   :  { %892 = vrot.lane.b32.xlu1 %v891_v25, %s3123_s24  ;;  %v901_v31 = vsel %vm566_vm6, %v899_v27, %v900_v28 }
 0x749   :  { %902 = vrot.lane.b32.xlu0 %v901_v31, %s4091_s25  ;;  %v883_v32 = vpop.f32.mrb[12].mxu0 }
 0x74a   :  { %v910_v34 = vrot.slane %v883_v32, 6  ;;  %v2608_v35 = vpop.f32.mrb[13].mxu0 }
 0x74b   :  { %v1167_v35 = vld [vmem:[%s4077_s15 + $0x8] sm:$0xff] }
 0x74c   :  { %904 = vrot.lane.b32.xlu1 %v900_v28, %s4091_s25  ;;  %v911_v36 = vsel %vm556_vm5, %v909_v33, %v910_v34 }
 0x74d   :  { %912 = vrot.lane.b32.xlu0 %v911_v36, %s4089_s27 }
 0x750   :  { %914 = vrot.lane.b32.xlu1 %v910_v34, %s4089_s27  ;;  %v1166_v34 = vld [vmem:[%s4077_s15] sm:$0xff] }
 0x751   :  { %v2897_v36 = vpack.c.bf16 %v1167_v35, %v1166_v34 }
 0x753   :  { %2898 = vmatprep.subr.bf16.mxu0 %v2897_v36 }
 0x754   :  { %2900 = vmatpush3.bf16.msra.mxu0 %v2897_v36 }
 0x7b6   :  { %v895_v37 = vpop.permute.xlu1 %894 }
 0x7b7   :  { %v919_v51 = vsel %vm600_vm8, %v868_v19, %v895_v37  ;;  %v1168_v37 = vld [vmem:[%s4077_s15 + $0x10] sm:$0xff] }
 0x7ba   :  { %v893_v38 = vpop.permute.xlu1 %892 }
 0x7bb   :  { %v903_v39 = vpop.permute.xlu0 %902  ;;  %v918_v44 = vsel %vm600_vm8, %v863_v17, %v893_v38  ;;  %v1169_v38 = vld [vmem:[%s4077_s15 + $0x18] sm:$0xff] }
 0x7bc   :  { %v921_v47 = vsel %vm920_vm11, %v918_v44, %v903_v39  ;;  %v2901_v39 = vpack.c.bf16 %v1169_v38, %v1168_v37  ;;  %v1170_v44 = vld [vmem:[%s4077_s15 + $0x20] sm:$0xff] }
 0x7bd   :  { %v2281_v37 = vld [vmem:[%s4103_s26 + $0x1] ss:$0 sm:$0xff] }
 0x7be   :  { %v905_v46 = vpop.permute.xlu1 %904  ;;  %2902 = vmatprep.subr.bf16.mxu0 %v2901_v39 }
 0x7bf   :  { %v913_v49 = vpop.permute.xlu0 %912  ;;  %v922_v52 = vsel %vm920_vm11, %v919_v51, %v905_v46  ;;  %2904 = vmatpush3.bf16.msra.mxu0 %v2901_v39  ;;  %v1171_v46 = vld [vmem:[%s4077_s15 + $0x28] sm:$0xff] }
 0x7c0   :  { %v924_v50 = vsel %vm923_vm12, %v921_v47, %v913_v49  ;;  %v2905_v47 = vpack.c.bf16 %v1171_v46, %v1170_v44  ;;  %v1172_v49 = vld [vmem:[%s4077_s15 + $0x30] sm:$0xff]  ;;  %v2282_v46 = vld [vmem:[%s4068_s6 + $0x1] ss:$0 sm:$0xff] }
 0x7c1   :  { %2617 = vmatprep.mubr.msk.f32.mxu1 %vm417_vm3, %v924_v50  ;;  %v1173_v50 = vld [vmem:[%s4077_s15 + $0x38] sm:$0xff] }
 0x7c2   :  { %v915_v53 = vpop.permute.xlu1 %914  ;;  %2906 = vmatprep.subr.bf16.mxu0 %v2905_v47  ;;  %v2909_v51 = vpack.c.bf16 %v1173_v50, %v1172_v49 }
 0x7c3   :  { %v925_v54 = vsel %vm923_vm12, %v922_v52, %v915_v53  ;;  %2908 = vmatpush3.bf16.msra.mxu0 %v2905_v47  ;;  %v2273_v52 = vld [vmem:[%s4076_s14] ss:$0 sm:$0xff] }
 0x7c4   :  { %2618 = vmatmul.mubr.msk.f32.vlgmr.msra.gmra.mrb[14].mxu1 %vm417_vm3, %v925_v54  ;;  %2910 = vmatprep.subr.bf16.mxu0 %v2909_v51 }
 0x7c5   :  { %2892 = vmatpush3.bf16.msra.mxu1 %v2889_v13 }
 0x7c6   :  { %2894 = vmatprep.subr.bf16.mxu1 %v2893_v16 }
 0x7c7   :  { %2912 = vmatpush3.bf16.msra.mxu0 %v2909_v51 }
 0x7c8   :  { %2921 = vmatprep.subr.bf16.mxu0 %v3118_v30 }
 0x7c9   :  { %2896 = vmatpush3.bf16.msra.mxu1 %v2893_v16 }
 0x897   :  { %v2619_v57 = vpop.f32.mrb[14].mxu1 }
 0x898   :  { %v1015_v58 = vadd.f32 %v2619_v57, %v2268_v56  ;;  %v1009_v60 = vpop.f32.mrb[15].mxu1 }
 0x899   :  { %v1010_v61 = vadd.f32 %v2268_v56, %v1009_v60 }
 0x89a   :  { %v3741_v62 = vadd.f32 %v1015_v58, %v3552_v42 }
 0x89b   :  { %v3744_v63 = vadd.f32 %v1010_v61, %v3557_v45 }
 0x89c   :  { %v1025_v41 = vsel %vm421_vm4, %v3741_v62, 0.0 }
 0x89d   :  { %1026 = vadd.xlane.f32.xlu1 %v1025_v41  ;;  %v1022_v1 = vsel %vm417_vm3, %v3744_v63, 0.0 }
 0x89e   :  { %1023 = vadd.xlane.f32.xlu0 %v1022_v1 }
 0x92a   :  { %v1027_v40 = vpop.xlane.xlu1 %1026 }
 0x92b   :  { %v1029_v2 = vmul.f32 0.03125, %v1027_v40  ;;  %v1024_v3 = vpop.xlane.xlu0 %1023 }
 0x92c   :  { %v1028_v4 = vmul.f32 0.03125, %v1024_v3 }
 0x92d   :  { %v1031_v6 = vsub.f32 %v3741_v62, %v1029_v2 }
 0x92e   :  { %v1030_v42 = vsub.f32 %v3744_v63, %v1028_v4 }
 0x92f   :  { %v1033_v8 = vmul.f32 %v1031_v6, %v1031_v6 }
 0x930   :  { %v1032_v7 = vmul.f32 %v1030_v42, %v1030_v42 }
 0x931   :  { %v1037_v9 = vsel %vm421_vm4, %v1033_v8, 0.0 }
 0x932   :  { %v1034_v45 = vsel %vm417_vm3, %v1032_v7, 0.0 }
 0x933   :  { %1035 = vadd.xlane.f32.xlu0 %v1034_v45 }
 0x937   :  { %1038 = vadd.xlane.f32.xlu0 %v1037_v9 }
 0x9c0   :  { %v1036_v17 = vpop.xlane.xlu0 %1035 }
 0x9c1   :  { %v1040_v18 = vmul.f32 0.03125, %v1036_v17 }
 0x9c3   :  { %v1042_v19 = vadd.f32 1e-06, %v1040_v18 }
 0x9c4   :  { %v1039_v20 = vpop.xlane.xlu0 %1038 }
 0x9c5   :  { %3049 = vrsqrt.f32 %v1042_v19  ;;  %v1041_v21 = vmul.f32 0.03125, %v1039_v20 }
 0x9c7   :  { %v1043_v22 = vadd.f32 1e-06, %v1041_v21 }
 0x9c9   :  { %3051 = vrsqrt.f32 %v1043_v22 }
 0x9cf   :  { %v3050_v23 = vpop.eup %3049 }
 0x9d0   :  { %v1046_v25 = vmul.f32 %v3050_v23, %v1030_v42  ;;  %v2276_v42 = vld [vmem:[%s4078_s16] ss:$0 sm:$0xff] }
 0x9d1   :  { %v2283_v23 = vld [vmem:[%s4069_s7 + $0x20] sm:$0xff] }
 0x9d2   :  { %v1054_v27 = vmul.f32 %v2271_v24, %v1046_v25 }
 0x9d3   :  { %v3052_v28 = vpop.eup %3051 }
 0x9d4   :  { %v1047_v29 = vmul.f32 %v3052_v28, %v1031_v6  ;;  %v1062_v31 = vadd.f32 %v2272_v26, %v1054_v27  ;;  %v2286_v27 = vld [vmem:[%s4069_s7 + $0x38] sm:$0xff] }
 0x9d6   :  { %v1055_v32 = vmul.f32 %v2271_v24, %v1047_v29  ;;  %2628 = vmatprep.mubr.msk.f32.mxu1 %vm417_vm3, %v1062_v31  ;;  %v2284_v24 = vld [vmem:[%s4069_s7 + $0x28] sm:$0xff] }
 0x9d7   :  { %v2913_v25 = vpack.c.bf16 %v2284_v24, %v2283_v23 }
 0x9d8   :  { %v1063_v33 = vadd.f32 %v2272_v26, %v1055_v32  ;;  %v2285_v26 = vld [vmem:[%s4069_s7 + $0x30] sm:$0xff] }
 0x9d9   :  { %2914 = vmatprep.subr.bf16.mxu1 %v2913_v25  ;;  %v2917_v28 = vpack.c.bf16 %v2286_v27, %v2285_v26 }
 0x9da   :  { %2629 = vmatmul.mubr.msk.f32.vlgmr.msra.gmra.mrb[16].mxu1 %vm417_vm3, %v1063_v33 }
 0x9db   :  { %2916 = vmatpush3.bf16.msra.mxu1 %v2913_v25 }
 0x9dc   :  { %2918 = vmatprep.subr.bf16.mxu1 %v2917_v28 }
 0x9df   :  { %2920 = vmatpush3.bf16.msra.mxu1 %v2917_v28 }
 0x9e0   :  { %2929 = vmatprep.subr.bf16.mxu1 %v3118_v30 }
 0xaad   :  { %v2630_v53 = vpop.f32.mrb[16].mxu1 }
 0xaae   :  { %v1153_v54 = vadd.f32 %v2630_v53, %v2273_v52  ;;  %v1147_v56 = vpop.f32.mrb[17].mxu1 }
 0xaaf   :  { %v1148_v57 = vadd.f32 %v2273_v52, %v1147_v56  ;;  %v2288_v52 = vld [vmem:[%s4070_s8 + $0x1] ss:$0 sm:$0xff] }
 0xab0   :  { %v1159_v58 = vmul.f32 0.70710677, %v1153_v54  ;;  %v1157_v3 = vmul.f32 0.5, %v1153_v54 }
 0xab1   :  { %v1158_v60 = vmul.f32 0.70710677, %v1148_v57  ;;  %v1156_v40 = vmul.f32 0.5, %v1148_v57 }
 0xab2   :  { %3053 = verf.f32 %v1159_v58 }
 0xab3   :  { %3055 = verf.f32 %v1158_v60 }
 0xabc   :  { %v3054_v61 = vpop.eup %3053 }
 0xabd   :  { %v3056_v41 = vpop.eup %3055  ;;  %v1163_v1 = vadd.f32 1.0, %v3054_v61 }
 0xabe   :  { %v1162_v2 = vadd.f32 1.0, %v3056_v41 }
 0xabf   :  { %v1165_v6 = vmul.f32 %v1163_v1, %v1157_v3 }
 0xac0   :  { %v1164_v4 = vmul.f32 %v1162_v2, %v1156_v40 }
 0xac2   :  { %2647 = vmatprep.mubr.msk.f32.mxu0 %vm1181_vm13, %v1164_v4 }
 0xac3   :  { %2648 = vmatmul.mubr.msk.f32.vlgmr.msra.gmra.mrb[14].mxu0 %vm1181_vm13, %v1165_v6 }
 0xac4   :  { %2671 = vmatprep.mubr.msk.f32.mxu0 %vm3120_vm7, %v3121_v43 }
 0xb96   :  { %v2649_v7 = vpop.f32.mrb[14].mxu0 }
 0xb97   :  { %v1260_v45 = vadd.f32 %v2649_v7, %v2276_v42  ;;  %v1254_v8 = vpop.f32.mrb[15].mxu0 }
 0xb98   :  { %v1255_v9 = vadd.f32 %v2276_v42, %v1254_v8 }
 0xb99   :  { %v3810_v11 = vadd.f32 %v1260_v45, %v3741_v62 }
 0xb9a   :  { %v3813_v12 = vadd.f32 %v1255_v9, %v3744_v63 }
 0xb9b   :  { %v1272_v13 = vsel %vm421_vm4, %v3810_v11, 0.0 }
 0xb9c   :  { %1273 = vadd.xlane.f32.xlu1 %v1272_v13  ;;  %v1269_v14 = vsel %vm417_vm3, %v3813_v12, 0.0 }
 0xb9d   :  { %1270 = vadd.xlane.f32.xlu0 %v1269_v14 }
 0xc29   :  { %v1274_v15 = vpop.xlane.xlu1 %1273 }
 0xc2a   :  { %v1276_v16 = vmul.f32 0.03125, %v1274_v15  ;;  %v1271_v17 = vpop.xlane.xlu0 %1270 }
 0xc2b   :  { %v1275_v18 = vmul.f32 0.03125, %v1271_v17 }
 0xc2c   :  { %v1278_v19 = vsub.f32 %v3810_v11, %v1276_v16 }
 0xc2d   :  { %v1277_v62 = vsub.f32 %v3813_v12, %v1275_v18 }
 0xc2e   :  { %v1280_v20 = vmul.f32 %v1278_v19, %v1278_v19 }
 0xc2f   :  { %v1279_v21 = vmul.f32 %v1277_v62, %v1277_v62 }
 0xc30   :  { %v1284_v63 = vsel %vm421_vm4, %v1280_v20, 0.0 }
 0xc31   :  { %1285 = vadd.xlane.f32.xlu1 %v1284_v63  ;;  %v1281_v22 = vsel %vm417_vm3, %v1279_v21, 0.0 }
 0xc32   :  { %1282 = vadd.xlane.f32.xlu0 %v1281_v22 }
 0xcbe   :  { %v1286_v29 = vpop.xlane.xlu1 %1285 }
 0xcbf   :  { %v1288_v31 = vmul.f32 0.03125, %v1286_v29  ;;  %v1283_v32 = vpop.xlane.xlu0 %1282 }
 0xcc0   :  { %v1287_v33 = vmul.f32 0.03125, %v1283_v32 }
 0xcc1   :  { %v1290_v34 = vadd.f32 1e-06, %v1288_v31 }
 0xcc2   :  { %v1289_v35 = vadd.f32 1e-06, %v1287_v33 }
 0xcc3   :  { %3057 = vrsqrt.f32 %v1290_v34 }
 0xcc4   :  { %3059 = vrsqrt.f32 %v1289_v35 }
 0xccd   :  { %v3058_v36 = vpop.eup %3057 }
 0xcce   :  { %v3060_v38 = vpop.eup %3059  ;;  %v1294_v39 = vmul.f32 %v3058_v36, %v1278_v19 }
 0xccf   :  { %v1293_v44 = vmul.f32 %v3060_v38, %v1277_v62 }
 0xcd0   :  { %v1302_v47 = vmul.f32 %v2281_v37, %v1294_v39 }
 0xcd1   :  { %v1301_v49 = vmul.f32 %v2281_v37, %v1293_v44 }
 0xcd2   :  { %v1310_v51 = vadd.f32 %v2282_v46, %v1302_v47 }
 0xcd3   :  { %v1309_v50 = vadd.f32 %v2282_v46, %v1301_v49 }
 0xcd5   :  { %2658 = vmatprep.mubr.msk.f32.mxu1 %vm417_vm3, %v1309_v50 }
 0xcd6   :  { %2659 = vmatmul.mubr.msk.f32.vlgmr.msra.gmra.mrb[18].mxu1 %vm417_vm3, %v1310_v51 }
 0xcd7   :  { %2696 = vmatprep.mubr.msk.f32.mxu1 %vm3120_vm7, %v3121_v43 }
 0xda9   :  { %v2660_v53 = vpop.f32.mrb[18].mxu1 }
 0xdaa   :  { %v1402_v54 = vadd.f32 %v2660_v53, %v2288_v52  ;;  %v1396_v56 = vpop.f32.mrb[19].mxu1 }
 0xdab   :  { %v1397_v57 = vadd.f32 %v2288_v52, %v1396_v56 }
 0xdac   :  { %v1408_v61 = vrot.slane %v1402_v54, 6  ;;  %v1417_v40 = vrot.slane %v1402_v54, 4  ;;  %v1426_v3 = vrot.slane %v1402_v54, 2 }
 0xdad   :  { %v1416_v58 = vrot.slane %v1397_v57, 4  ;;  %v1407_v60 = vrot.slane %v1397_v57, 6  ;;  %v1425_v41 = vrot.slane %v1397_v57, 2 }
 0xdaf   :  { %1419 = vrot.lane.b32.xlu1 %v1416_v58, %s3115_s30  ;;  %1410 = vrot.lane.b32.xlu0 %v1407_v60, %s3116_s5  ;;  %v1409_v1 = vsel %vm556_vm5, %v1407_v60, %v1408_v61  ;;  %v1418_v2 = vsel %vm566_vm6, %v1416_v58, %v1417_v40  ;;  %v1427_v4 = vsel %vm408_vm2, %v1425_v41, %v1426_v3 }
 0xdb3   :  { %1428 = vrot.lane.b32.xlu0 %v1425_v41, %s3117_s23  ;;  %1412 = vrot.lane.b32.xlu1 %v1409_v1, %s3116_s5 }
 0xdb7   :  { %1421 = vrot.lane.b32.xlu1 %v1418_v2, %s3115_s30 }
 0xdbb   :  { %1430 = vrot.lane.b32.xlu1 %v1427_v4, %s3117_s23 }
 0xe21   :  { %v1420_v6 = vpop.permute.xlu1 %1419  ;;  %v1411_v42 = vpop.permute.xlu0 %1410 }
 0xe22   :  { %v1433_v7 = vsel %vm556_vm5, %v1402_v54, %v1411_v42 }
 0xe23   :  { %v3005_v45 = vpack.i.bf16 %v1433_v7, %v1397_v57 }
 0xe25   :  { %3006 = vrot.lane.b32.xlu0 %v3005_v45, %s3119_s1  ;;  %v1413_v8 = vpop.permute.xlu1 %1412  ;;  %v1429_v9 = vpop.permute.xlu0 %1428 }
 0xe26   :  { %v1434_v14 = vsel %vm566_vm6, %v1413_v8, %v1420_v6 }
 0xe29   :  { %v1422_v13 = vpop.permute.xlu1 %1421 }
 0xe2a   :  { %v1435_v15 = vsel %vm408_vm2, %v1422_v13, %v1429_v9 }
 0xe2b   :  { %v3862_v16 = vpack.i.bf16 %v1435_v15, %v1434_v14 }
 0xe2d   :  { %3011 = vrot.lane.b32.xlu1 %v3862_v16, %s3119_s1  ;;  %v3866_v17 = vpop.permute.xlu1 %1430 }
 0xe2e   :  { %1447 = vrot.lane.b32.xlu0 %v3866_v17, %s3119_s1 }
 0xe97   :  { %v3007_v18 = vpop.permute.xlu0 %3006 }
 0xe98   :  { %v3009_v19 = vunpack.i.h.bf16 %v3007_v18  ;;  %v3008_v62 = vunpack.i.l.bf16 %v3007_v18 }
 0xe9a   :  { %v2922_v20 = vpack.c.bf16 %v3009_v19, %v3008_v62 }
 0xe9c   :  { %2924 = vmatpush3.bf16.xpose.msk.msra.mxu0 %vm3622_vm9, %v2922_v20 }
 0xe9d   :  { %2925 = vmatprep.subr.bf16.mxu0 %v3118_v30 }
 0xe9f   :  { %v3012_v21 = vpop.permute.xlu1 %3011 }
 0xea0   :  { %v3014_v63 = vunpack.i.h.bf16 %v3012_v21  ;;  %v3013_v22 = vunpack.i.l.bf16 %v3012_v21  ;;  %v1448_v24 = vpop.permute.xlu0 %1447 }
 0xea2   :  { %v2926_v23 = vpack.c.bf16 %v3014_v63, %v3013_v22 }
 0xea4   :  { %2928 = vmatpush3.bf16.xpose.msk.msra.mxu0 %vm3622_vm9, %v2926_v23 }
 0xea5   :  { %2669 = vmatprep.subr.mxu0 %v3121_v43 }
 0xeac   :  { %2670 = vmatpush3.xpose.msk.msra.mxu0 %vm600_vm8, %v1448_v24 }
 0xeaf   :  { %2672 = vmatmul.mubr.msk.f32.vlgmr.msra.gmra.mrb[16].mxu0 %vm600_vm8, %v1397_v57 }
 0xeb0   :  { %2674 = vmatprep.mubr.msk.f32.mxu0 %vm3120_vm7, %v3121_v43 }
 0xeb3   :  { %2675 = vmatmul.mubr.msk.f32.gmra.mrb[18].mxu0 %vm600_vm8, %v1433_v7 }
 0xeb4   :  { %2677 = vmatprep.mubr.msk.f32.mxu0 %vm3120_vm7, %v3121_v43 }
 0xeb7   :  { %2678 = vmatmul.mubr.msk.f32.gmra.mrb[20].mxu0 %vm600_vm8, %v1434_v14 }
 0xeb8   :  { %2680 = vmatprep.mubr.msk.f32.mxu0 %vm3120_vm7, %v3121_v43 }
 0xebb   :  { %2681 = vmatmul.mubr.msk.f32.gmra.mrb[22].mxu0 %vm600_vm8, %v1435_v15 }
 0xebc   :  { %2683 = vmatprep.mubr.msk.f32.mxu0 %vm3120_vm7, %v3121_v43 }
 0xebf   :  { %2684 = vmatmul.mubr.msk.f32.gmra.mrb[24].mxu0 %vm600_vm8, %v3866_v17 }
 0xf82   :  { %v1535_v48 = vpop.f32.mrb[16].mxu0 }
 0xf83   :  { %v1536_v25 = vadd.f32 %v1535_v48, %v3650_v55  ;;  %v2673_v26 = vpop.f32.mrb[17].mxu0 }
 0xf85   :  { %v1559_v27 = vsel %vm711_vm10, %v1536_v25, -inf }
 0xf86   :  { %1560 = vmax.xlane.f32.xlu1 %v1559_v27  ;;  %v1540_v28 = vpop.f32.mrb[18].mxu0 }
 0xf87   :  { %v1541_v29 = vadd.f32 %v1540_v28, %v3656_v59  ;;  %v2676_v31 = vpop.f32.mrb[19].mxu0 }
 0xf89   :  { %v1562_v32 = vsel %vm711_vm10, %v1541_v29, -inf }
 0xf8a   :  { %1563 = vmax.xlane.f32.xlu0 %v1562_v32  ;;  %v1545_v33 = vpop.f32.mrb[20].mxu0 }
 0xf8b   :  { %v1546_v34 = vadd.f32 %v1545_v33, %v3663_v0  ;;  %v2679_v35 = vpop.f32.mrb[21].mxu0 }
 0xf8c   :  { %v2307_v35 = vld [vmem:[%s4071_s9 + $0x28] sm:$0xff] }
 0xf8d   :  { %v1565_v36 = vsel %vm711_vm10, %v1546_v34, -inf }
 0xf8e   :  { %1566 = vmax.xlane.f32.xlu0 %v1565_v36  ;;  %v1550_v37 = vpop.f32.mrb[22].mxu0 }
 0xf8f   :  { %v1551_v55 = vadd.f32 %v1550_v37, %v3670_v5  ;;  %v2682_v38 = vpop.f32.mrb[23].mxu0  ;;  %v2308_v37 = vld [vmem:[%s4071_s9 + $0x30] sm:$0xff] }
 0xf91   :  { %v1568_v39 = vsel %vm711_vm10, %v1551_v55, -inf }
 0xf92   :  { %1569 = vmax.xlane.f32.xlu0 %v1568_v39  ;;  %v1555_v44 = vpop.f32.mrb[24].mxu0 }
 0xf93   :  { %v1556_v59 = vadd.f32 %v1555_v44, %v3677_v10  ;;  %v2685_v46 = vpop.f32.mrb[25].mxu0 }
 0xf95   :  { %v1571_v47 = vsel %vm711_vm10, %v1556_v59, -inf }
 0xf96   :  { %1572 = vmax.xlane.f32.xlu1 %v1571_v47 }
 0xfa7   :  { %3016 = vrot.lane.b32.xlu1 %v3005_v45, %s3122_s2 }
0x1013   :  { %v1561_v0 = vpop.xlane.xlu1 %1560 }
0x1014   :  { %v1574_v49 = vsub.f32 %v1536_v25, %v1561_v0 }
0x1016   :  { %v1579_v50 = vmul.f32 1.442695, %v1574_v49 }
0x1017   :  { %v1564_v51 = vpop.xlane.xlu0 %1563 }
0x1018   :  { %3061 = vpow2.f32 %v1579_v50  ;;  %v1575_v52 = vsub.f32 %v1541_v29, %v1564_v51 }
0x101a   :  { %v1581_v5 = vmul.f32 1.442695, %v1575_v52 }
0x101b   :  { %v1567_v53 = vpop.xlane.xlu0 %1566 }
0x101c   :  { %3063 = vpow2.f32 %v1581_v5  ;;  %v1576_v54 = vsub.f32 %v1546_v34, %v1567_v53  ;;  %v2306_v34 = vld [vmem:[%s4071_s9 + $0x20] sm:$0xff] }
0x101d   :  { %v2935_v36 = vpack.c.bf16 %v2307_v35, %v2306_v34 }
0x101e   :  { %v1583_v56 = vmul.f32 1.442695, %v1576_v54 }
0x101f   :  { %v1570_v57 = vpop.xlane.xlu0 %1569 }
0x1020   :  { %3065 = vpow2.f32 %v1583_v56  ;;  %v1577_v10 = vsub.f32 %v1551_v55, %v1570_v57  ;;  %v2309_v55 = vld [vmem:[%s4071_s9 + $0x38] sm:$0xff]  ;;  %s4107_s9 = smov 16  }
0x1021   :  { %v2939_v38 = vpack.c.bf16 %v2309_v55, %v2308_v37 }
0x1022   :  { %v3062_v58 = vpop.eup %3061  ;;  %v1585_v60 = vmul.f32 1.442695, %v1577_v10 }
0x1023   :  { %v1573_v61 = vpop.xlane.xlu1 %1572  ;;  %v1589_v41 = vsel %vm711_vm10, %v3062_v58, 0.0 }
0x1024   :  { %3067 = vpow2.f32 %v1585_v60  ;;  %v1578_v1 = vsub.f32 %v1556_v59, %v1573_v61  ;;  %1590 = vadd.xlane.f32.xlu0 %v1589_v41 }
0x1026   :  { %v3064_v40 = vpop.eup %3063  ;;  %v1587_v2 = vmul.f32 1.442695, %v1578_v1 }
0x1027   :  { %v3017_v3 = vpop.permute.xlu1 %3016  ;;  %v1592_v4 = vsel %vm711_vm10, %v3064_v40, 0.0 }
0x1028   :  { %3069 = vpow2.f32 %v1587_v2  ;;  %v3019_v6 = vunpack.i.h.bf16 %v3017_v3  ;;  %v3018_v42 = vunpack.i.l.bf16 %v3017_v3  ;;  %1593 = vadd.xlane.f32.xlu1 %v1592_v4 }
0x102a   :  { %v3066_v7 = vpop.eup %3065  ;;  %v2930_v45 = vpack.c.bf16 %v3019_v6, %v3018_v42 }
0x102b   :  { %v1595_v8 = vsel %vm711_vm10, %v3066_v7, 0.0 }
0x102c   :  { %1596 = vadd.xlane.f32.xlu0 %v1595_v8  ;;  %2931 = vmatpush3.bf16.msra.mxu1 %v2930_v45 }
0x102d   :  { %2932 = vmatprep.subr.bf16.mxu1 %v3118_v30 }
0x102e   :  { %v3068_v9 = vpop.eup %3067 }
0x102f   :  { %v1598_v13 = vsel %vm711_vm10, %v3068_v9, 0.0 }
0x1030   :  { %1599 = vadd.xlane.f32.xlu1 %v1598_v13  ;;  %v2311_v13 = vld [vmem:[%s4072_s10 + $0x1] ss:$0 sm:$0xff] }
0x1032   :  { %v3070_v14 = vpop.eup %3069 }
0x1033   :  { %v1601_v15 = vsel %vm711_vm10, %v3070_v14, 0.0 }
0x1034   :  { %1602 = vadd.xlane.f32.xlu0 %v1601_v15 }
0x1041   :  { %1622 = vrot.lane.b32.xlu1 %v3866_v17, %s3122_s2 }
0x104a   :  { %3021 = vrot.lane.b32.xlu0 %v3862_v16, %s3122_s2 }
0x10b1   :  { %v1591_v18 = vpop.xlane.xlu0 %1590 }
0x10b2   :  { %3071 = vrcp.f32 %v1591_v18 }
0x10b5   :  { %v1594_v62 = vpop.xlane.xlu1 %1593 }
0x10b6   :  { %3073 = vrcp.f32 %v1594_v62 }
0x10b9   :  { %v1597_v19 = vpop.xlane.xlu0 %1596 }
0x10ba   :  { %3075 = vrcp.f32 %v1597_v19 }
0x10bc   :  { %v3072_v48 = vpop.eup %3071 }
0x10bd   :  { %v1600_v23 = vpop.xlane.xlu1 %1599  ;;  %v1609_v17 = vmul.f32 %v3072_v48, %v3062_v58 }
0x10be   :  { %3077 = vrcp.f32 %v1600_v23 }
0x10c0   :  { %v3074_v16 = vpop.eup %3073 }
0x10c1   :  { %v1603_v20 = vpop.xlane.xlu0 %1602  ;;  %v1623_v25 = vpop.permute.xlu1 %1622  ;;  %v1610_v26 = vmul.f32 %v3074_v16, %v3064_v40 }
0x10c2   :  { %3079 = vrcp.f32 %v1603_v20 }
0x10c4   :  { %v3076_v27 = vpop.eup %3075 }
0x10c5   :  { %v3022_v21 = vpop.permute.xlu0 %3021  ;;  %v1611_v28 = vmul.f32 %v3076_v27, %v3066_v7  ;;  %v2318_v27 = vld [vmem:[%s4075_s13 + $0x20] sm:$0xff] }
0x10c6   :  { %v3024_v63 = vunpack.i.h.bf16 %v3022_v21  ;;  %v3023_v22 = vunpack.i.l.bf16 %v3022_v21 }
0x10c8   :  { %v2933_v24 = vpack.c.bf16 %v3024_v63, %v3023_v22  ;;  %v3078_v29 = vpop.eup %3077 }
0x10c9   :  { %v1612_v31 = vmul.f32 %v3078_v29, %v3068_v9 }
0x10ca   :  { %2934 = vmatpush3.bf16.msra.mxu1 %v2933_v24 }
0x10cb   :  { %2694 = vmatprep.subr.mxu1 %v3121_v43 }
0x10cc   :  { %v3080_v32 = vpop.eup %3079 }
0x10cd   :  { %v1613_v33 = vmul.f32 %v3080_v32, %v3070_v14  ;;  %v2321_v32 = vld [vmem:[%s4075_s13 + $0x38] sm:$0xff] }
0x10ce   :  { %2695 = vmatpush3.msra.mxu1 %v1623_v25 }
0x10cf   :  { %2697 = vmatmul.mubr.msk.f32.vlgmr.msra.gmra.mrb[20].mxu1 %vm711_vm10, %v1609_v17  ;;  %2936 = vmatprep.subr.bf16.mxu1 %v2935_v36 }
0x10d0   :  { %2699 = vmatprep.mubr.msk.f32.mxu1 %vm3120_vm7, %v3121_v43  ;;  %2938 = vmatpush3.bf16.msra.mxu1 %v2935_v36 }
0x10d1   :  { %2940 = vmatprep.subr.bf16.mxu1 %v2939_v38 }
0x10d3   :  { %2700 = vmatmul.mubr.msk.f32.gmra.mrb[22].mxu1 %vm711_vm10, %v1610_v26 }
0x10d4   :  { %2702 = vmatprep.mubr.msk.f32.mxu1 %vm3120_vm7, %v3121_v43  ;;  %2942 = vmatpush3.bf16.msra.mxu1 %v2939_v38 }
0x10d7   :  { %2703 = vmatmul.mubr.msk.f32.gmra.mrb[24].mxu1 %vm711_vm10, %v1611_v28  ;;  %v2319_v28 = vld [vmem:[%s4075_s13 + $0x28] sm:$0xff] }
0x10d8   :  { %2705 = vmatprep.mubr.msk.f32.mxu1 %vm3120_vm7, %v3121_v43  ;;  %v2943_v29 = vpack.c.bf16 %v2319_v28, %v2318_v27  ;;  %v2148_v27 = vld [vmem:[%s4081_s19] sm:$0xff] }
0x10da   :  { %2944 = vmatprep.subr.bf16.mxu0 %v2943_v29 }
0x10db   :  { %2706 = vmatmul.mubr.msk.f32.gmra.mrb[26].mxu1 %vm711_vm10, %v1612_v31  ;;  %2946 = vmatpush3.bf16.msra.mxu0 %v2943_v29  ;;  %v2320_v31 = vld [vmem:[%s4075_s13 + $0x30] sm:$0xff] }
0x10dc   :  { %2708 = vmatprep.mubr.msk.f32.mxu1 %vm3120_vm7, %v3121_v43  ;;  %v2150_v29 = vld [vmem:[%s4081_s19 + $0x10] sm:$0xff] }
0x10df   :  { %2709 = vmatmul.mubr.msk.f32.gmra.mrb[28].mxu1 %vm711_vm10, %v1613_v33  ;;  %v2947_v33 = vpack.c.bf16 %v2321_v32, %v2320_v31  ;;  %v2151_v31 = vld [vmem:[%s4081_s19 + $0x18] sm:$0xff] }
0x10e0   :  { %v2971_v32 = vpack.c.bf16 %v2151_v31, %v2150_v29 }
0x10e1   :  { %2948 = vmatprep.subr.bf16.mxu0 %v2947_v33 }
0x10e2   :  { %2950 = vmatpush3.bf16.msra.mxu0 %v2947_v33 }
0x10e3   :  { %2967 = vmatprep.subr.bf16.mxu0 %v3118_v30 }
0x11a2   :  { %v1710_v39 = vpop.f32.mrb[20].mxu1 }
0x11a3   :  { %v2698_v44 = vpop.f32.mrb[21].mxu1 }
0x11a4   :  { %v2316_v44 = vld [vmem:[%s4073_s11 + $0x1] ss:$0 sm:$0xff] }
0x11a6   :  { %v1715_v59 = vpop.f32.mrb[22].mxu1 }
0x11a7   :  { %v2701_v46 = vpop.f32.mrb[23].mxu1  ;;  %v1736_v0 = vrot.slane %v1715_v59, 2 }
0x11a8   :  { %v2317_v46 = vld [vmem:[%s4074_s12 + $0x1] ss:$0 sm:$0xff] }
0x11aa   :  { %v1720_v47 = vpop.f32.mrb[24].mxu1 }
0x11ab   :  { %v1737_v49 = vrot.slane %v1720_v47, 2  ;;  %v2704_v50 = vpop.f32.mrb[25].mxu1  ;;  %v1746_v5 = vrot.slane %v1720_v47, 4 }
0x11ad   :  { %1741 = vrot.lane.b32.xlu1 %v1737_v49, %s3123_s24  ;;  %v1738_v51 = vsel %vm408_vm2, %v1736_v0, %v1737_v49 }
0x11ae   :  { %v1725_v52 = vpop.f32.mrb[26].mxu1 }
0x11af   :  { %v1747_v53 = vrot.slane %v1725_v52, 4  ;;  %v2707_v54 = vpop.f32.mrb[27].mxu1  ;;  %v1756_v10 = vrot.slane %v1725_v52, 6 }
0x11b1   :  { %1739 = vrot.lane.b32.xlu1 %v1738_v51, %s3123_s24  ;;  %v1748_v56 = vsel %vm566_vm6, %v1746_v5, %v1747_v53  ;;  %v2326_v5 = vld [vmem:[%s4077_s15 + $0x40] sm:$0xff] }
0x11b2   :  { %1749 = vrot.lane.b32.xlu0 %v1748_v56, %s4107_s9  ;;  %v1730_v57 = vpop.f32.mrb[28].mxu1  ;;  %v2328_v56 = vld [vmem:[%s4077_s15 + $0x50] sm:$0xff] }
0x11b3   :  { %v1757_v58 = vrot.slane %v1730_v57, 6  ;;  %v2710_v60 = vpop.f32.mrb[29].mxu1  ;;  %v2329_v57 = vld [vmem:[%s4077_s15 + $0x58] sm:$0xff] }
0x11b5   :  { %1751 = vrot.lane.b32.xlu1 %v1747_v53, %s4107_s9  ;;  %v1758_v61 = vsel %vm556_vm5, %v1756_v10, %v1757_v58  ;;  %v2327_v53 = vld [vmem:[%s4077_s15 + $0x48] sm:$0xff]  ;;  %v2330_v10 = vld [vmem:[%s4077_s15 + $0x60] sm:$0xff]  ;;  %s3126_s9 = smov [#allocation2]  }
0x11b6   :  { %1759 = vrot.lane.b32.xlu0 %v1758_v61, %s4108_s4  ;;  %v2951_v54 = vpack.c.bf16 %v2327_v53, %v2326_v5  ;;  %v2332_v61 = vld [vmem:[%s4077_s15 + $0x70] sm:$0xff] }
0x11b8   :  { %2952 = vmatprep.subr.bf16.mxu1 %v2951_v54 }
0x11b9   :  { %1761 = vrot.lane.b32.xlu1 %v1757_v58, %s4108_s4  ;;  %v2331_v58 = vld [vmem:[%s4077_s15 + $0x68] sm:$0xff]  ;;  %s2239_s4 = sshll.u32 %s3126_s9, 4  ;;  %s2240_s4 = int_to_ptr.vmem [resolvable:$true] %s2239_s4 }
0x11ba   :  { %v2959_v60 = vpack.c.bf16 %v2331_v58, %v2330_v10  ;;  %p3096_p1 = scmp.lt.s32.totalorder %s2240_s4, %s2240_s4 }
0x121f   :  { %v1742_v41 = vpop.permute.xlu1 %1741 }
0x1220   :  { %v1766_v7 = vsel %vm600_vm8, %v1715_v59, %v1742_v41  ;;  %v2333_v41 = vld [vmem:[%s4077_s15 + $0x78] sm:$0xff] }
0x1223   :  { %v1740_v1 = vpop.permute.xlu1 %1739 }
0x1224   :  { %v1750_v40 = vpop.permute.xlu0 %1749  ;;  %v1765_v2 = vsel %vm600_vm8, %v1710_v39, %v1740_v1  ;;  %v2963_v1 = vpack.c.bf16 %v2333_v41, %v2332_v61 }
0x1225   :  { %v1767_v4 = vsel %vm920_vm11, %v1765_v2, %v1750_v40  ;;  %v2323_v40 = vld [vmem:[%s4076_s14 + $0x1] ss:$0 sm:$0xff] }
0x1227   :  { %v1752_v3 = vpop.permute.xlu1 %1751 }
0x1228   :  { %v1760_v6 = vpop.permute.xlu0 %1759  ;;  %v1768_v45 = vsel %vm920_vm11, %v1766_v7, %v1752_v3 }
0x1229   :  { %v1769_v42 = vsel %vm923_vm12, %v1767_v4, %v1760_v6 }
0x122a   :  { %2719 = vmatprep.mubr.msk.f32.mxu1 %vm417_vm3, %v1769_v42 }
0x122b   :  { %v1762_v8 = vpop.permute.xlu1 %1761 }
0x122c   :  { %v1770_v9 = vsel %vm923_vm12, %v1768_v45, %v1762_v8 }
0x122d   :  { %2720 = vmatmul.mubr.msk.f32.vlgmr.msra.gmra.mrb[30].mxu1 %vm417_vm3, %v1770_v9 }
0x122e   :  { %2954 = vmatpush3.bf16.msra.mxu1 %v2951_v54 }
0x1300   :  { %v2721_v14 = vpop.f32.mrb[30].mxu1 }
0x1301   :  { %v1862_v15 = vadd.f32 %v2721_v14, %v2311_v13  ;;  %v1856_v18 = vpop.f32.mrb[31].mxu1 }
0x1302   :  { %v1857_v19 = vadd.f32 %v2311_v13, %v1856_v18 }
0x1303   :  { %v1866_v62 = vadd.f32 %v1862_v15, %v3810_v11 }
0x1304   :  { %v3960_v20 = vadd.f32 %v1857_v19, %v3813_v12 }
0x1305   :  { %v1874_v21 = vsel %vm421_vm4, %v1866_v62, 0.0 }
0x1306   :  { %1875 = vadd.xlane.f32.xlu1 %v1874_v21  ;;  %v1871_v63 = vsel %vm417_vm3, %v3960_v20, 0.0 }
0x1307   :  { %1872 = vadd.xlane.f32.xlu0 %v1871_v63 }
0x1393   :  { %v1876_v22 = vpop.xlane.xlu1 %1875 }
0x1394   :  { %v1878_v23 = vmul.f32 0.03125, %v1876_v22  ;;  %v1873_v24 = vpop.xlane.xlu0 %1872 }
0x1395   :  { %v1877_v48 = vmul.f32 0.03125, %v1873_v24 }
0x1396   :  { %v1880_v17 = vsub.f32 %v1866_v62, %v1878_v23  ;;  %v2335_v62 = vld [vmem:[%s4078_s16 + $0x1] ss:$0 sm:$0xff] }
0x1397   :  { %v1879_v25 = vsub.f32 %v3960_v20, %v1877_v48 }
0x1398   :  { %v1882_v26 = vmul.f32 %v1880_v17, %v1880_v17 }
0x1399   :  { %v1881_v16 = vmul.f32 %v1879_v25, %v1879_v25 }
0x139a   :  { %v1886_v12 = vsel %vm421_vm4, %v1882_v26, 0.0 }
0x139b   :  { %v1883_v11 = vsel %vm417_vm3, %v1881_v16, 0.0 }
0x139c   :  { %1884 = vadd.xlane.f32.xlu0 %v1883_v11 }
0x13a0   :  { %1887 = vadd.xlane.f32.xlu0 %v1886_v12 }
0x1429   :  { %v1885_v34 = vpop.xlane.xlu0 %1884 }
0x142a   :  { %v1889_v35 = vmul.f32 0.03125, %v1885_v34 }
0x142c   :  { %v1891_v36 = vadd.f32 1e-06, %v1889_v35 }
0x142d   :  { %v1888_v37 = vpop.xlane.xlu0 %1887 }
0x142e   :  { %3081 = vrsqrt.f32 %v1891_v36  ;;  %v1890_v55 = vmul.f32 0.03125, %v1888_v37  ;;  %v2338_v37 = vld [vmem:[%s4079_s17] ss:$0 sm:$0xff]  ;;  %s3091_s17 = scalar_lea.vmem %s2240_s4, 32 }
0x142f   :  { %p3092_p0 = scmp.ne.s32.totalorder %s2240_s4, %s3091_s17  ;;  %p3097_p2 = scmp.lt.s32.totalorder %s3091_s17, %s3091_s17 }
0x1430   :  { %v1892_v38 = vadd.f32 1e-06, %v1890_v55  ;;  %v2339_v55 = vld [vmem:[%s4080_s18] ss:$0 sm:$0xff] }
0x1431   :  { %p3098_p3 = por %p3097_p2, %p3096_p1 }
0x1432   :  { %3083 = vrsqrt.f32 %v1892_v38 }
0x1433   :  { %p3099_p4 = pnand %p3098_p3, %p3092_p0 }
0x1438   :  { %v3082_v39 = vpop.eup %3081 }
0x1439   :  { %v1895_v59 = vmul.f32 %v3082_v39, %v1879_v25 }
0x143b   :  { %v1903_v47 = vmul.f32 %v2316_v44, %v1895_v59 }
0x143c   :  { %v3084_v0 = vpop.eup %3083 }
0x143d   :  { %v1896_v49 = vmul.f32 %v3084_v0, %v1880_v17  ;;  %v1911_v50 = vadd.f32 %v2317_v46, %v1903_v47 }
0x143f   :  { %v1904_v51 = vmul.f32 %v2316_v44, %v1896_v49  ;;  %2730 = vmatprep.mubr.msk.f32.mxu0 %vm417_vm3, %v1911_v50  ;;  %v2340_v44 = vld [vmem:[%s4082_s20] ss:$0 sm:$0xff] }
0x1441   :  { %v1912_v52 = vadd.f32 %v2317_v46, %v1904_v51 }
0x1443   :  { %2731 = vmatmul.mubr.msk.f32.vlgmr.msra.gmra.mrb[26].mxu0 %vm417_vm3, %v1912_v52 }
0x1444   :  { %2760 = vmatprep.mubr.msk.f32.mxu0 %vm3120_vm7, %v3121_v43  ;;  %v2955_v43 = vpack.c.bf16 %v2329_v57, %v2328_v56 }
0x1446   :  { %2956 = vmatprep.subr.bf16.mxu1 %v2955_v43 }
0x1447   :  { %2958 = vmatpush3.bf16.msra.mxu1 %v2955_v43 }
0x1448   :  { %2960 = vmatprep.subr.bf16.mxu1 %v2959_v60 }
0x144b   :  { %2962 = vmatpush3.bf16.msra.mxu1 %v2959_v60 }
0x144c   :  { %2964 = vmatprep.subr.bf16.mxu1 %v2963_v1 }
0x144f   :  { %2966 = vmatpush3.bf16.msra.mxu1 %v2963_v1 }
0x1516   :  { %v2732_v2 = vpop.f32.mrb[26].mxu0 }
0x1517   :  { %v2004_v3 = vadd.f32 %v2732_v2, %v2323_v40  ;;  %v1998_v4 = vpop.f32.mrb[27].mxu0 }
0x1518   :  { %v1999_v6 = vadd.f32 %v2323_v40, %v1998_v4 }
0x1519   :  { %v2010_v42 = vmul.f32 0.70710677, %v2004_v3  ;;  %v2008_v15 = vmul.f32 0.5, %v2004_v3 }
0x151a   :  { %v2009_v7 = vmul.f32 0.70710677, %v1999_v6  ;;  %v2007_v13 = vmul.f32 0.5, %v1999_v6 }
0x151b   :  { %3085 = verf.f32 %v2010_v42 }
0x151c   :  { %3087 = verf.f32 %v2009_v7 }
0x1525   :  { %v3086_v45 = vpop.eup %3085 }
0x1526   :  { %v3088_v8 = vpop.eup %3087  ;;  %v2014_v9 = vadd.f32 1.0, %v3086_v45 }
0x1527   :  { %v2013_v14 = vadd.f32 1.0, %v3088_v8 }
0x1528   :  { %v2016_v19 = vmul.f32 %v2014_v9, %v2008_v15 }
0x1529   :  { %v2015_v18 = vmul.f32 %v2013_v14, %v2007_v13 }
0x152b   :  { %2749 = vmatprep.mubr.msk.f32.mxu1 %vm1181_vm13, %v2015_v18 }
0x152c   :  { %2750 = vmatmul.mubr.msk.f32.vlgmr.msra.gmra.mrb[32].mxu1 %vm1181_vm13, %v2016_v19 }
0x15ff   :  { %v2751_v21 = vpop.f32.mrb[32].mxu1 }
0x1600   :  { %v2106_v63 = vpop.f32.mrb[33].mxu1 }
0x1601   :  { %v2107_v22 = vadd.f32 %v2335_v62, %v2106_v63 }
0x1603   :  { %v2114_v23 = vadd.f32 %v2107_v22, %v3960_v20  ;;  %v2149_v20 = vld [vmem:[%s4081_s19 + $0x8] sm:$0xff] }
0x1604   :  { %v2968_v28 = vpack.c.bf16 %v2149_v20, %v2148_v27 }
0x1605   :  { %v2116_v24 = vrot.slane %v2114_v23, 4 }
0x1606   :  { %2969 = vmatpush3.bf16.msra.mxu0 %v2968_v28 }
0x1607   :  { %v2118_v48 = vsel %vm404_vm0, %v2114_v23, %v2116_v24  ;;  %2970 = vmatprep.subr.bf16.mxu0 %v3118_v30 }
0x1608   :  { %v2121_v17 = vsel %vm421_vm4, %v2118_v48, 0.0 }
0x1609   :  { %2122 = vadd.xlane.f32.xlu0 %v2121_v17 }
0x160a   :  { %2972 = vmatpush3.bf16.msra.mxu0 %v2971_v32 }
0x1696   :  { %v2123_v25 = vpop.xlane.xlu0 %2122 }
0x1697   :  { %v2124_v16 = vmul.f32 0.03125, %v2123_v25 }
0x1699   :  { %v2125_v11 = vsub.f32 %v2118_v48, %v2124_v16 }
0x169b   :  { %v2126_v26 = vmul.f32 %v2125_v11, %v2125_v11 }
0x169d   :  { %v2127_v12 = vsel %vm421_vm4, %v2126_v26, 0.0 }
0x169e   :  { %2128 = vadd.xlane.f32.xlu1 %v2127_v12 }
0x172b   :  { %v2129_v33 = vpop.xlane.xlu1 %2128 }
0x172c   :  { %v2130_v34 = vmul.f32 0.03125, %v2129_v33 }
0x172e   :  { %v2131_v35 = vadd.f32 1e-06, %v2130_v34 }
0x1730   :  { %3089 = vrsqrt.f32 %v2131_v35 }
0x173a   :  { %v3090_v36 = vpop.eup %3089 }
0x173b   :  { %v2133_v30 = vmul.f32 %v3090_v36, %v2125_v11 }
0x173d   :  { %v2140_v38 = vmul.f32 %v2338_v37, %v2133_v30 }
0x173f   :  { %v2147_v39 = vadd.f32 %v2339_v55, %v2140_v38 }
0x1741   :  { %2761 = vmatmul.mubr.msk.f32.vlgmr.msra.gmra.mrb[28].mxu0 %vm417_vm3, %v2147_v39 }
0x1814   :  { %v2228_v59 = vpop.f32.mrb[28].mxu0 }
0x1815   :  { %v2229_v46 = vadd.f32 %v2340_v44, %v2228_v59  ;;  %v2762_v47 = vpop.f32.mrb[29].mxu0 }
0x1817   :  { %2232 = vst [vmem:[#allocation2] sm:$0x3] %v2229_v46 }
0x1818   :  { %3102 = shalt.err (!%p3099_p4)
}
0x1819   :  { %s3103_s3 = scalar_lea.hbm %s4083_s21, 32 }
0x181a   :  { %p3104_p5 = scmp.ne.s32.totalorder %s4083_s21, %s3103_s3  ;;  %p3107_p6 = scmp.lt.u32.totalorder %s3103_s3, %s4083_s21 }
0x181c   :  { %p3109_p7 = pnand %p3107_p6, %p3104_p5 }
0x181e   :  { %3112 = shalt.err (!%p3109_p7)
}
0x181f   :  { %2242 = dma.vmem_to_hbm [thread:$0]  %s2240_s4, 32, %s4083_s21, [#allocation3]  }
0x1820   :  { %3113 = dma.done.wait [#allocation3], 32  }
0x1821   :  { %3114 = vsyncadd [#allocation3], 4294967264 }
0x1822   :  { %2246 = vsyncpa [#allocation3], 1 }

</bundles_post_ra>
